<compile_context>
chip_gen: v5e
topology: v5e:2x2
jax: 0.10.0
libtpu: 0.0.40
codegen_flags: <defaults>
</compile_context>

<pallas_src>
import jax
import jax.numpy as jnp
from jax import lax
from jax.experimental import pallas as pl
from jax.experimental.pallas import tpu as pltpu


def _memory_embed_kernel(x_ref, a_ref, wx_ref, wa_ref, whh_ref, b_ref,
                         h0_ref, c0_ref,
                         out_ref, hn_ref, cn_ref,
                         xproj_scr):
    # Shapes (all static):
    #   x_ref    : (T*B, W)      flattened observations
    #   a_ref    : (T*B, A)      flattened one-hot actions
    #   wx_ref   : (W, 4H)       W_ih[:, :W]^T
    #   wa_ref   : (A, 4H)       W_ih[:, W:]^T
    #   whh_ref  : (H, 4H)       W_hh^T
    #   b_ref    : (1, 4H)       bias_ih + bias_hh
    #   h0/c0    : (B, H)
    #   out_ref  : (T, B, H)     merged [mu | scale]
    #   hn/cn    : (B, H)
    #   xproj_scr: (T*B, 4H)     hoisted input projection
    H = whh_ref.shape[0]
    G = whh_ref.shape[1]            # 4H
    W = H // 2                      # world_size
    B = h0_ref.shape[0]
    T = out_ref.shape[0]

    # ---- Non-recurrent pass: input projection for all timesteps at once ----
    xproj_scr[...] = (
        jnp.dot(x_ref[...], wx_ref[...], preferred_element_type=jnp.float32)
        + jnp.dot(a_ref[...], wa_ref[...], preferred_element_type=jnp.float32)
        + b_ref[...]                                # (T*B, 4H), bias broadcast
    )

    whh = whh_ref[...]                              # resident, hoisted
    lane = jax.lax.broadcasted_iota(jnp.int32, (B, H), dimension=1)
    is_mu = lane < W                                # first W lanes = mu

    # ---- Recurrent pass: only h @ W_hh^T + elementwise per step ----
    def step(t, carry):
        h, c = carry
        gates = (xproj_scr[pl.ds(t * B, B), :]
                 + jnp.dot(h, whh, preferred_element_type=jnp.float32))  # (B, 4H)

        # Activate full (B, 4H) vregs once, slice afterwards (gate order i,f,g,o).
        sig = jax.nn.sigmoid(gates)
        tnh = jnp.tanh(gates)
        i = sig[:, 0 * H:1 * H]
        f = sig[:, 1 * H:2 * H]
        g = tnh[:, 2 * H:3 * H]
        o = sig[:, 3 * H:4 * H]

        c_new = f * c + i * g
        h_new = o * jnp.tanh(c_new)

        # Merged lane-dense output: lanes [:W] = mu = h, lanes [W:] = sigmoid(h)+1e-5.
        out_ref[t] = jnp.where(is_mu, h_new, jax.nn.sigmoid(h_new) + 1e-5)
        return (h_new, c_new)

    h_fin, c_fin = lax.fori_loop(0, T, step, (h0_ref[...], c0_ref[...]),
                                 unroll=True)
    hn_ref[...] = h_fin
    cn_ref[...] = c_fin


def memory_embed_forward(x, action, hidden_state, params):
    """x: (T, B, world_size), action: (T, B, action_size),
    hidden_state: (h0, c0) each (1, B, hidden_size).
    Returns (mu, scale, (h_n, c_n))."""
    h0, c0 = hidden_state
    T, B, world_size = x.shape
    _, _, action_size = action.shape
    H = 2 * world_size

    # Weight prep (cheap glue): split W_ih into the x / action halves and
    # pre-transpose so the kernel does row-major (rows, D) @ (D, 4H).
    wih = params["weight_ih"].astype(jnp.float32)                    # (4H, W+A)
    wx_t = wih[:, :world_size].T                                     # (W, 4H)
    wa_t = wih[:, world_size:].T                                     # (A, 4H)
    whh_t = params["weight_hh"].T.astype(jnp.float32)                # (H, 4H)
    bias = (params["bias_ih"] + params["bias_hh"]).reshape(1, 4 * H).astype(jnp.float32)

    x_flat = x.reshape(T * B, world_size).astype(jnp.float32)
    a_flat = action.reshape(T * B, action_size).astype(jnp.float32)
    h0_2d = h0.reshape(B, H).astype(jnp.float32)
    c0_2d = c0.reshape(B, H).astype(jnp.float32)

    out_shapes = (
        jax.ShapeDtypeStruct((T, B, H), jnp.float32),   # merged [mu | scale]
        jax.ShapeDtypeStruct((1, B, H), jnp.float32),   # h_n
        jax.ShapeDtypeStruct((1, B, H), jnp.float32),   # c_n
    )

    grid_spec = pltpu.PrefetchScalarGridSpec(
        num_scalar_prefetch=0,
        grid=(1,),
        in_specs=[
            pl.BlockSpec((T * B, world_size), lambda i: (0, 0)),    # x (flat)
            pl.BlockSpec((T * B, action_size), lambda i: (0, 0)),   # action (flat)
            pl.BlockSpec((world_size, 4 * H), lambda i: (0, 0)),    # W_x^T
            pl.BlockSpec((action_size, 4 * H), lambda i: (0, 0)),   # W_a^T
            pl.BlockSpec((H, 4 * H), lambda i: (0, 0)),             # W_hh^T
            pl.BlockSpec((1, 4 * H), lambda i: (0, 0)),             # bias
            pl.BlockSpec((B, H), lambda i: (0, 0)),                 # h0
            pl.BlockSpec((B, H), lambda i: (0, 0)),                 # c0
        ],
        out_specs=[
            pl.BlockSpec((T, B, H), lambda i: (0, 0, 0)),           # [mu | scale]
            pl.BlockSpec((None, B, H), lambda i: (0, 0, 0)),        # h_n (squeezed)
            pl.BlockSpec((None, B, H), lambda i: (0, 0, 0)),        # c_n (squeezed)
        ],
        scratch_shapes=[
            pltpu.VMEM((T * B, 4 * H), jnp.float32),                # hoisted x-proj
        ],
    )

    out_seq, h_n, c_n = pl.pallas_call(
        _memory_embed_kernel,
        out_shape=out_shapes,
        grid_spec=grid_spec,
        compiler_params=pltpu.CompilerParams(
            dimension_semantics=("arbitrary",)),
    )(x_flat, a_flat, wx_t, wa_t, whh_t, bias, h0_2d, c0_2d)

    mu = out_seq[:, :, :world_size]
    scale = out_seq[:, :, world_size:]
    return mu, scale, (h_n, c_n)


def memory_embed_reference(x, action, hidden_state, params):
    """Pure-JAX reference (lax.scan LSTM) for verification."""
    h0, c0 = hidden_state
    world_size = x.shape[-1]
    H = 2 * world_size
    n_x = jnp.concatenate([x, action], axis=2).astype(jnp.float32)
    wih = params["weight_ih"]
    whh = params["weight_hh"]
    b = params["bias_ih"] + params["bias_hh"]

    def step(carry, x_t):
        h, c = carry
        gates = x_t @ wih.T + h @ whh.T + b
        i = jax.nn.sigmoid(gates[:, 0 * H:1 * H])
        f = jax.nn.sigmoid(gates[:, 1 * H:2 * H])
        g = jnp.tanh(gates[:, 2 * H:3 * H])
        o = jax.nn.sigmoid(gates[:, 3 * H:4 * H])
        c_new = f * c + i * g
        h_new = o * jnp.tanh(c_new)
        return (h_new, c_new), h_new

    (h_n, c_n), hs = lax.scan(step, (h0[0], c0[0]), n_x)
    mu = hs[:, :, :world_size]
    scale = jax.nn.sigmoid(hs[:, :, world_size:]) + 1e-5
    return mu, scale, (h_n[None], c_n[None])


if __name__ == "__main__":
    # Small shapes consistent with the module's forward.
    world_size = 16
    action_size = 4
    T, B = 8, 2
    H = 2 * world_size
    D_in = world_size + action_size

    key = jax.random.PRNGKey(0)
    k_x, k_a, k_wih, k_whh, k_bih, k_bhh = jax.random.split(key, 6)

    x = jax.random.normal(k_x, (T, B, world_size), dtype=jnp.float32)
    # one-hot actions, like torch.eye(action_size)[actions]
    act_idx = jax.random.randint(k_a, (T, B), 0, action_size)
    action = jax.nn.one_hot(act_idx, action_size, dtype=jnp.float32)

    # Deterministic parameter init (PyTorch LSTM uses U(-1/sqrt(H), 1/sqrt(H))).
    bound = 1.0 / jnp.sqrt(jnp.float32(H))
    params = {
        "weight_ih": jax.random.uniform(k_wih, (4 * H, D_in), jnp.float32, -bound, bound),
        "weight_hh": jax.random.uniform(k_whh, (4 * H, H), jnp.float32, -bound, bound),
        "bias_ih": jax.random.uniform(k_bih, (4 * H,), jnp.float32, -bound, bound),
        "bias_hh": jax.random.uniform(k_bhh, (4 * H,), jnp.float32, -bound, bound),
    }

    # generate_hidden_state(bs=B): zeros (num_layers=1, B, H)
    h0 = jnp.zeros((1, B, H), jnp.float32)
    c0 = jnp.zeros((1, B, H), jnp.float32)

    mu, scale, (h_n, c_n) = memory_embed_forward(x, action, (h0, c0), params)
    jax.block_until_ready((mu, scale, h_n, c_n))

    mu_r, scale_r, (h_nr, c_nr) = memory_embed_reference(x, action, (h0, c0), params)
    assert jnp.allclose(mu, mu_r, atol=1e-5), "mu mismatch"
    assert jnp.allclose(scale, scale_r, atol=1e-5), "scale mismatch"
    assert jnp.allclose(h_n, h_nr, atol=1e-5), "h_n mismatch"
    assert jnp.allclose(c_n, c_nr, atol=1e-5), "c_n mismatch"

    # TODO(synk): the torch.distributions.Normal object itself has no Pallas
    # equivalent; the kernel returns its parameters (mu, scale) instead.
    print("KERNEL_OK")
</pallas_src>

<mosaic_0001>
module attributes {stable_mosaic.version = 11 : i64} {
  func.func @_memory_embed_kernel(%arg0: i32, %arg1: memref<16x16xf32, #tpu.memory_space<vmem>>, %arg2: memref<16x4xf32, #tpu.memory_space<vmem>>, %arg3: memref<16x128xf32, #tpu.memory_space<vmem>>, %arg4: memref<4x128xf32, #tpu.memory_space<vmem>>, %arg5: memref<32x128xf32, #tpu.memory_space<vmem>>, %arg6: memref<1x128xf32, #tpu.memory_space<vmem>>, %arg7: memref<2x32xf32, #tpu.memory_space<vmem>>, %arg8: memref<2x32xf32, #tpu.memory_space<vmem>>, %arg9: memref<8x2x32xf32, #tpu.memory_space<vmem>>, %arg10: memref<1x2x32xf32, #tpu.memory_space<vmem>>, %arg11: memref<1x2x32xf32, #tpu.memory_space<vmem>>, %arg12: memref<16x128xf32, #tpu.memory_space<vmem>>) attributes {dimension_semantics = [#tpu.dimension_semantics<arbitrary>], iteration_bounds = array<i64: 1>, scalar_prefetch = 0 : i64, scratch_operands = 1 : i64, tpu.core_type = #tpu.core_type<tc>, window_params = [{pipeline_mode = #tpu.pipeline_mode<synchronous>, transform_indices = @transform_0, window_bounds = array<i64: 16, 16>}, {pipeline_mode = #tpu.pipeline_mode<synchronous>, transform_indices = @transform_1, window_bounds = array<i64: 16, 4>}, {pipeline_mode = #tpu.pipeline_mode<synchronous>, transform_indices = @transform_2, window_bounds = array<i64: 16, 128>}, {pipeline_mode = #tpu.pipeline_mode<synchronous>, transform_indices = @transform_3, window_bounds = array<i64: 4, 128>}, {pipeline_mode = #tpu.pipeline_mode<synchronous>, transform_indices = @transform_4, window_bounds = array<i64: 32, 128>}, {pipeline_mode = #tpu.pipeline_mode<synchronous>, transform_indices = @transform_5, window_bounds = array<i64: 1, 128>}, {pipeline_mode = #tpu.pipeline_mode<synchronous>, transform_indices = @transform_6, window_bounds = array<i64: 2, 32>}, {pipeline_mode = #tpu.pipeline_mode<synchronous>, transform_indices = @transform_7, window_bounds = array<i64: 2, 32>}, {pipeline_mode = #tpu.pipeline_mode<synchronous>, transform_indices = @transform_8, window_bounds = array<i64: 8, 2, 32>}, {pipeline_mode = #tpu.pipeline_mode<synchronous>, transform_indices = @transform_9, window_bounds = array<i64: 1, 2, 32>}, {pipeline_mode = #tpu.pipeline_mode<synchronous>, transform_indices = @transform_10, window_bounds = array<i64: 1, 2, 32>}]} {
    %c0 = arith.constant 0 : index
    %c0_0 = arith.constant 0 : index
    %0 = vector.load %arg1[%c0, %c0_0] : memref<16x16xf32, #tpu.memory_space<vmem>>, vector<16x16xf32>
    %c0_1 = arith.constant 0 : index
    %c0_2 = arith.constant 0 : index
    %1 = vector.load %arg3[%c0_1, %c0_2] : memref<16x128xf32, #tpu.memory_space<vmem>>, vector<16x128xf32>
    %cst = arith.constant dense<0.000000e+00> : vector<16x128xf32>
    %2 = tpu.matmul %0, %1, %cst {dimension_numbers = #tpu.dot_dimension_numbers<[1], [0], [0], [1], [0, 0, 1, 1], [], []>} : vector<16x16xf32>, vector<16x128xf32>, vector<16x128xf32> -> vector<16x128xf32>
    %c0_3 = arith.constant 0 : index
    %c0_4 = arith.constant 0 : index
    %3 = vector.load %arg2[%c0_3, %c0_4] : memref<16x4xf32, #tpu.memory_space<vmem>>, vector<16x4xf32>
    %c0_5 = arith.constant 0 : index
    %c0_6 = arith.constant 0 : index
    %4 = vector.load %arg4[%c0_5, %c0_6] : memref<4x128xf32, #tpu.memory_space<vmem>>, vector<4x128xf32>
    %cst_7 = arith.constant dense<0.000000e+00> : vector<16x128xf32>
    %5 = tpu.matmul %3, %4, %cst_7 {dimension_numbers = #tpu.dot_dimension_numbers<[1], [0], [0], [1], [0, 0, 1, 1], [], []>} : vector<16x4xf32>, vector<4x128xf32>, vector<16x128xf32> -> vector<16x128xf32>
    %6 = arith.addf %2, %5 : vector<16x128xf32>
    %c0_8 = arith.constant 0 : index
    %c0_9 = arith.constant 0 : index
    %7 = vector.load %arg6[%c0_8, %c0_9] : memref<1x128xf32, #tpu.memory_space<vmem>>, vector<1x128xf32>
    %8 = vector.broadcast %7 : vector<1x128xf32> to vector<16x128xf32>
    %9 = arith.addf %6, %8 : vector<16x128xf32>
    %c0_10 = arith.constant 0 : index
    %c0_11 = arith.constant 0 : index
    %10 = vector.load %arg12[%c0_10, %c0_11] : memref<16x128xf32, #tpu.memory_space<vmem>>, vector<16x128xf32>
    tpu.vector_store %arg12[%c0_10, %c0_11], %9 {strides = array<i32>} : memref<16x128xf32, #tpu.memory_space<vmem>>, vector<16x128xf32>,
    %c0_12 = arith.constant 0 : index
    %c0_13 = arith.constant 0 : index
    %11 = vector.load %arg5[%c0_12, %c0_13] : memref<32x128xf32, #tpu.memory_space<vmem>>, vector<32x128xf32>
    %12 = tpu.iota {dimensions = array<i32: 1>} : vector<2x32xi32>
    %c16_i32 = arith.constant 16 : i32
    %13 = vector.broadcast %c16_i32 : i32 to vector<2x32xi32>
    %14 = arith.cmpi slt, %12, %13 : vector<2x32xi32>
    %c0_14 = arith.constant 0 : index
    %c0_15 = arith.constant 0 : index
    %15 = vector.load %arg7[%c0_14, %c0_15] : memref<2x32xf32, #tpu.memory_space<vmem>>, vector<2x32xf32>
    %c0_16 = arith.constant 0 : index
    %c0_17 = arith.constant 0 : index
    %16 = vector.load %arg8[%c0_16, %c0_17] : memref<2x32xf32, #tpu.memory_space<vmem>>, vector<2x32xf32>
    %c0_i32 = arith.constant 0 : i32
    %c2_i32 = arith.constant 2 : i32
    %17 = arith.muli %c0_i32, %c2_i32 : i32
    %18 = arith.index_cast %17 : i32 to index
    %c0_18 = arith.constant 0 : index
    %19 = vector.load %arg12[%18, %c0_18] : memref<16x128xf32, #tpu.memory_space<vmem>>, vector<2x128xf32>
    %cst_19 = arith.constant dense<0.000000e+00> : vector<2x128xf32>
    %20 = tpu.matmul %15, %11, %cst_19 {dimension_numbers = #tpu.dot_dimension_numbers<[1], [0], [0], [1], [0, 0, 1, 1], [], []>} : vector<2x32xf32>, vector<32x128xf32>, vector<2x128xf32> -> vector<2x128xf32>
    %21 = arith.addf %19, %20 : vector<2x128xf32>
    %22 = arith.negf %21 : vector<2x128xf32>
    %23 = math.exp %22 : vector<2x128xf32>
    %cst_20 = arith.constant 1.000000e+00 : f32
    %24 = vector.broadcast %cst_20 : f32 to vector<2x128xf32>
    %25 = arith.addf %24, %23 : vector<2x128xf32>
    %26 = arith.divf %24, %25 : vector<2x128xf32>
    %27 = math.tanh %21 : vector<2x128xf32>
    %28 = vector.extract_strided_slice %26 {offsets = [0, 0], sizes = [2, 32], strides = [1, 1]} : vector<2x128xf32> to vector<2x32xf32>
    %29 = vector.extract_strided_slice %26 {offsets = [0, 32], sizes = [2, 32], strides = [1, 1]} : vector<2x128xf32> to vector<2x32xf32>
    %30 = vector.extract_strided_slice %27 {offsets = [0, 64], sizes = [2, 32], strides = [1, 1]} : vector<2x128xf32> to vector<2x32xf32>
    %31 = vector.extract_strided_slice %26 {offsets = [0, 96], sizes = [2, 32], strides = [1, 1]} : vector<2x128xf32> to vector<2x32xf32>
    %32 = arith.mulf %29, %16 : vector<2x32xf32>
    %33 = arith.mulf %28, %30 : vector<2x32xf32>
    %34 = arith.addf %32, %33 : vector<2x32xf32>
    %35 = math.tanh %34 : vector<2x32xf32>
    %36 = arith.mulf %31, %35 : vector<2x32xf32>
    %37 = arith.negf %36 : vector<2x32xf32>
    %38 = math.exp %37 : vector<2x32xf32>
    %cst_21 = arith.constant 1.000000e+00 : f32
    %39 = vector.broadcast %cst_21 : f32 to vector<2x32xf32>
    %40 = arith.addf %39, %38 : vector<2x32xf32>
    %41 = arith.divf %39, %40 : vector<2x32xf32>
    %cst_22 = arith.constant 9.99999974E-6 : f32
    %42 = vector.broadcast %cst_22 : f32 to vector<2x32xf32>
    %43 = arith.addf %41, %42 : vector<2x32xf32>
    %44 = arith.select %14, %36, %43 : vector<2x32xi1>, vector<2x32xf32>
    %45 = arith.index_cast %c0_i32 : i32 to index
    %c0_23 = arith.constant 0 : index
    %c0_24 = arith.constant 0 : index
    %46 = vector.load %arg9[%45, %c0_23, %c0_24] : memref<8x2x32xf32, #tpu.memory_space<vmem>>, vector<1x2x32xf32>
    %47 = vector.shape_cast %46 : vector<1x2x32xf32> to vector<2x32xf32>
    %48 = vector.shape_cast %44 : vector<2x32xf32> to vector<1x2x32xf32>
    tpu.vector_store %arg9[%45, %c0_23, %c0_24], %48 {strides = array<i32>} : memref<8x2x32xf32, #tpu.memory_space<vmem>>, vector<1x2x32xf32>,
    %c1_i32 = arith.constant 1 : i32
    %c2_i32_25 = arith.constant 2 : i32
    %49 = arith.muli %c1_i32, %c2_i32_25 : i32
    %50 = arith.index_cast %49 : i32 to index
    %c0_26 = arith.constant 0 : index
    %51 = vector.load %arg12[%50, %c0_26] : memref<16x128xf32, #tpu.memory_space<vmem>>, vector<2x128xf32>
    %cst_27 = arith.constant dense<0.000000e+00> : vector<2x128xf32>
    %52 = tpu.matmul %36, %11, %cst_27 {dimension_numbers = #tpu.dot_dimension_numbers<[1], [0], [0], [1], [0, 0, 1, 1], [], []>} : vector<2x32xf32>, vector<32x128xf32>, vector<2x128xf32> -> vector<2x128xf32>
    %53 = arith.addf %51, %52 : vector<2x128xf32>
    %54 = arith.negf %53 : vector<2x128xf32>
    %55 = math.exp %54 : vector<2x128xf32>
    %cst_28 = arith.constant 1.000000e+00 : f32
    %56 = vector.broadcast %cst_28 : f32 to vector<2x128xf32>
    %57 = arith.addf %56, %55 : vector<2x128xf32>
    %58 = arith.divf %56, %57 : vector<2x128xf32>
    %59 = math.tanh %53 : vector<2x128xf32>
    %60 = vector.extract_strided_slice %58 {offsets = [0, 0], sizes = [2, 32], strides = [1, 1]} : vector<2x128xf32> to vector<2x32xf32>
    %61 = vector.extract_strided_slice %58 {offsets = [0, 32], sizes = [2, 32], strides = [1, 1]} : vector<2x128xf32> to vector<2x32xf32>
    %62 = vector.extract_strided_slice %59 {offsets = [0, 64], sizes = [2, 32], strides = [1, 1]} : vector<2x128xf32> to vector<2x32xf32>
    %63 = vector.extract_strided_slice %58 {offsets = [0, 96], sizes = [2, 32], strides = [1, 1]} : vector<2x128xf32> to vector<2x32xf32>
    %64 = arith.mulf %61, %34 : vector<2x32xf32>
    %65 = arith.mulf %60, %62 : vector<2x32xf32>
    %66 = arith.addf %64, %65 : vector<2x32xf32>
    %67 = math.tanh %66 : vector<2x32xf32>
    %68 = arith.mulf %63, %67 : vector<2x32xf32>
    %69 = arith.negf %68 : vector<2x32xf32>
    %70 = math.exp %69 : vector<2x32xf32>
    %cst_29 = arith.constant 1.000000e+00 : f32
    %71 = vector.broadcast %cst_29 : f32 to vector<2x32xf32>
    %72 = arith.addf %71, %70 : vector<2x32xf32>
    %73 = arith.divf %71, %72 : vector<2x32xf32>
    %cst_30 = arith.constant 9.99999974E-6 : f32
    %74 = vector.broadcast %cst_30 : f32 to vector<2x32xf32>
    %75 = arith.addf %73, %74 : vector<2x32xf32>
    %76 = arith.select %14, %68, %75 : vector<2x32xi1>, vector<2x32xf32>
    %77 = arith.index_cast %c1_i32 : i32 to index
    %c0_31 = arith.constant 0 : index
    %c0_32 = arith.constant 0 : index
    %78 = vector.load %arg9[%77, %c0_31, %c0_32] : memref<8x2x32xf32, #tpu.memory_space<vmem>>, vector<1x2x32xf32>
    %79 = vector.shape_cast %78 : vector<1x2x32xf32> to vector<2x32xf32>
    %80 = vector.shape_cast %76 : vector<2x32xf32> to vector<1x2x32xf32>
    tpu.vector_store %arg9[%77, %c0_31, %c0_32], %80 {strides = array<i32>} : memref<8x2x32xf32, #tpu.memory_space<vmem>>, vector<1x2x32xf32>,
    %c2_i32_33 = arith.constant 2 : i32
    %c2_i32_34 = arith.constant 2 : i32
    %81 = arith.muli %c2_i32_33, %c2_i32_34 : i32
    %82 = arith.index_cast %81 : i32 to index
    %c0_35 = arith.constant 0 : index
    %83 = vector.load %arg12[%82, %c0_35] : memref<16x128xf32, #tpu.memory_space<vmem>>, vector<2x128xf32>
    %cst_36 = arith.constant dense<0.000000e+00> : vector<2x128xf32>
    %84 = tpu.matmul %68, %11, %cst_36 {dimension_numbers = #tpu.dot_dimension_numbers<[1], [0], [0], [1], [0, 0, 1, 1], [], []>} : vector<2x32xf32>, vector<32x128xf32>, vector<2x128xf32> -> vector<2x128xf32>
    %85 = arith.addf %83, %84 : vector<2x128xf32>
    %86 = arith.negf %85 : vector<2x128xf32>
    %87 = math.exp %86 : vector<2x128xf32>
    %cst_37 = arith.constant 1.000000e+00 : f32
    %88 = vector.broadcast %cst_37 : f32 to vector<2x128xf32>
    %89 = arith.addf %88, %87 : vector<2x128xf32>
    %90 = arith.divf %88, %89 : vector<2x128xf32>
    %91 = math.tanh %85 : vector<2x128xf32>
    %92 = vector.extract_strided_slice %90 {offsets = [0, 0], sizes = [2, 32], strides = [1, 1]} : vector<2x128xf32> to vector<2x32xf32>
    %93 = vector.extract_strided_slice %90 {offsets = [0, 32], sizes = [2, 32], strides = [1, 1]} : vector<2x128xf32> to vector<2x32xf32>
    %94 = vector.extract_strided_slice %91 {offsets = [0, 64], sizes = [2, 32], strides = [1, 1]} : vector<2x128xf32> to vector<2x32xf32>
    %95 = vector.extract_strided_slice %90 {offsets = [0, 96], sizes = [2, 32], strides = [1, 1]} : vector<2x128xf32> to vector<2x32xf32>
    %96 = arith.mulf %93, %66 : vector<2x32xf32>
    %97 = arith.mulf %92, %94 : vector<2x32xf32>
    %98 = arith.addf %96, %97 : vector<2x32xf32>
    %99 = math.tanh %98 : vector<2x32xf32>
    %100 = arith.mulf %95, %99 : vector<2x32xf32>
    %101 = arith.negf %100 : vector<2x32xf32>
    %102 = math.exp %101 : vector<2x32xf32>
    %cst_38 = arith.constant 1.000000e+00 : f32
    %103 = vector.broadcast %cst_38 : f32 to vector<2x32xf32>
    %104 = arith.addf %103, %102 : vector<2x32xf32>
    %105 = arith.divf %103, %104 : vector<2x32xf32>
    %cst_39 = arith.constant 9.99999974E-6 : f32
    %106 = vector.broadcast %cst_39 : f32 to vector<2x32xf32>
    %107 = arith.addf %105, %106 : vector<2x32xf32>
    %108 = arith.select %14, %100, %107 : vector<2x32xi1>, vector<2x32xf32>
    %109 = arith.index_cast %c2_i32_33 : i32 to index
    %c0_40 = arith.constant 0 : index
    %c0_41 = arith.constant 0 : index
    %110 = vector.load %arg9[%109, %c0_40, %c0_41] : memref<8x2x32xf32, #tpu.memory_space<vmem>>, vector<1x2x32xf32>
    %111 = vector.shape_cast %110 : vector<1x2x32xf32> to vector<2x32xf32>
    %112 = vector.shape_cast %108 : vector<2x32xf32> to vector<1x2x32xf32>
    tpu.vector_store %arg9[%109, %c0_40, %c0_41], %112 {strides = array<i32>} : memref<8x2x32xf32, #tpu.memory_space<vmem>>, vector<1x2x32xf32>,
    %c3_i32 = arith.constant 3 : i32
    %c2_i32_42 = arith.constant 2 : i32
    %113 = arith.muli %c3_i32, %c2_i32_42 : i32
    %114 = arith.index_cast %113 : i32 to index
    %c0_43 = arith.constant 0 : index
    %115 = vector.load %arg12[%114, %c0_43] : memref<16x128xf32, #tpu.memory_space<vmem>>, vector<2x128xf32>
    %cst_44 = arith.constant dense<0.000000e+00> : vector<2x128xf32>
    %116 = tpu.matmul %100, %11, %cst_44 {dimension_numbers = #tpu.dot_dimension_numbers<[1], [0], [0], [1], [0, 0, 1, 1], [], []>} : vector<2x32xf32>, vector<32x128xf32>, vector<2x128xf32> -> vector<2x128xf32>
    %117 = arith.addf %115, %116 : vector<2x128xf32>
    %118 = arith.negf %117 : vector<2x128xf32>
    %119 = math.exp %118 : vector<2x128xf32>
    %cst_45 = arith.constant 1.000000e+00 : f32
    %120 = vector.broadcast %cst_45 : f32 to vector<2x128xf32>
    %121 = arith.addf %120, %119 : vector<2x128xf32>
    %122 = arith.divf %120, %121 : vector<2x128xf32>
    %123 = math.tanh %117 : vector<2x128xf32>
    %124 = vector.extract_strided_slice %122 {offsets = [0, 0], sizes = [2, 32], strides = [1, 1]} : vector<2x128xf32> to vector<2x32xf32>
    %125 = vector.extract_strided_slice %122 {offsets = [0, 32], sizes = [2, 32], strides = [1, 1]} : vector<2x128xf32> to vector<2x32xf32>
    %126 = vector.extract_strided_slice %123 {offsets = [0, 64], sizes = [2, 32], strides = [1, 1]} : vector<2x128xf32> to vector<2x32xf32>
    %127 = vector.extract_strided_slice %122 {offsets = [0, 96], sizes = [2, 32], strides = [1, 1]} : vector<2x128xf32> to vector<2x32xf32>
    %128 = arith.mulf %125, %98 : vector<2x32xf32>
    %129 = arith.mulf %124, %126 : vector<2x32xf32>
    %130 = arith.addf %128, %129 : vector<2x32xf32>
    %131 = math.tanh %130 : vector<2x32xf32>
    %132 = arith.mulf %127, %131 : vector<2x32xf32>
    %133 = arith.negf %132 : vector<2x32xf32>
    %134 = math.exp %133 : vector<2x32xf32>
    %cst_46 = arith.constant 1.000000e+00 : f32
    %135 = vector.broadcast %cst_46 : f32 to vector<2x32xf32>
    %136 = arith.addf %135, %134 : vector<2x32xf32>
    %137 = arith.divf %135, %136 : vector<2x32xf32>
    %cst_47 = arith.constant 9.99999974E-6 : f32
    %138 = vector.broadcast %cst_47 : f32 to vector<2x32xf32>
    %139 = arith.addf %137, %138 : vector<2x32xf32>
    %140 = arith.select %14, %132, %139 : vector<2x32xi1>, vector<2x32xf32>
    %141 = arith.index_cast %c3_i32 : i32 to index
    %c0_48 = arith.constant 0 : index
    %c0_49 = arith.constant 0 : index
    %142 = vector.load %arg9[%141, %c0_48, %c0_49] : memref<8x2x32xf32, #tpu.memory_space<vmem>>, vector<1x2x32xf32>
    %143 = vector.shape_cast %142 : vector<1x2x32xf32> to vector<2x32xf32>
    %144 = vector.shape_cast %140 : vector<2x32xf32> to vector<1x2x32xf32>
    tpu.vector_store %arg9[%141, %c0_48, %c0_49], %144 {strides = array<i32>} : memref<8x2x32xf32, #tpu.memory_space<vmem>>, vector<1x2x32xf32>,
    %c4_i32 = arith.constant 4 : i32
    %c2_i32_50 = arith.constant 2 : i32
    %145 = arith.muli %c4_i32, %c2_i32_50 : i32
    %146 = arith.index_cast %145 : i32 to index
    %c0_51 = arith.constant 0 : index
    %147 = vector.load %arg12[%146, %c0_51] : memref<16x128xf32, #tpu.memory_space<vmem>>, vector<2x128xf32>
    %cst_52 = arith.constant dense<0.000000e+00> : vector<2x128xf32>
    %148 = tpu.matmul %132, %11, %cst_52 {dimension_numbers = #tpu.dot_dimension_numbers<[1], [0], [0], [1], [0, 0, 1, 1], [], []>} : vector<2x32xf32>, vector<32x128xf32>, vector<2x128xf32> -> vector<2x128xf32>
    %149 = arith.addf %147, %148 : vector<2x128xf32>
    %150 = arith.negf %149 : vector<2x128xf32>
    %151 = math.exp %150 : vector<2x128xf32>
    %cst_53 = arith.constant 1.000000e+00 : f32
    %152 = vector.broadcast %cst_53 : f32 to vector<2x128xf32>
    %153 = arith.addf %152, %151 : vector<2x128xf32>
    %154 = arith.divf %152, %153 : vector<2x128xf32>
    %155 = math.tanh %149 : vector<2x128xf32>
    %156 = vector.extract_strided_slice %154 {offsets = [0, 0], sizes = [2, 32], strides = [1, 1]} : vector<2x128xf32> to vector<2x32xf32>
    %157 = vector.extract_strided_slice %154 {offsets = [0, 32], sizes = [2, 32], strides = [1, 1]} : vector<2x128xf32> to vector<2x32xf32>
    %158 = vector.extract_strided_slice %155 {offsets = [0, 64], sizes = [2, 32], strides = [1, 1]} : vector<2x128xf32> to vector<2x32xf32>
    %159 = vector.extract_strided_slice %154 {offsets = [0, 96], sizes = [2, 32], strides = [1, 1]} : vector<2x128xf32> to vector<2x32xf32>
    %160 = arith.mulf %157, %130 : vector<2x32xf32>
    %161 = arith.mulf %156, %158 : vector<2x32xf32>
    %162 = arith.addf %160, %161 : vector<2x32xf32>
    %163 = math.tanh %162 : vector<2x32xf32>
    %164 = arith.mulf %159, %163 : vector<2x32xf32>
    %165 = arith.negf %164 : vector<2x32xf32>
    %166 = math.exp %165 : vector<2x32xf32>
    %cst_54 = arith.constant 1.000000e+00 : f32
    %167 = vector.broadcast %cst_54 : f32 to vector<2x32xf32>
    %168 = arith.addf %167, %166 : vector<2x32xf32>
    %169 = arith.divf %167, %168 : vector<2x32xf32>
    %cst_55 = arith.constant 9.99999974E-6 : f32
    %170 = vector.broadcast %cst_55 : f32 to vector<2x32xf32>
    %171 = arith.addf %169, %170 : vector<2x32xf32>
    %172 = arith.select %14, %164, %171 : vector<2x32xi1>, vector<2x32xf32>
    %173 = arith.index_cast %c4_i32 : i32 to index
    %c0_56 = arith.constant 0 : index
    %c0_57 = arith.constant 0 : index
    %174 = vector.load %arg9[%173, %c0_56, %c0_57] : memref<8x2x32xf32, #tpu.memory_space<vmem>>, vector<1x2x32xf32>
    %175 = vector.shape_cast %174 : vector<1x2x32xf32> to vector<2x32xf32>
    %176 = vector.shape_cast %172 : vector<2x32xf32> to vector<1x2x32xf32>
    tpu.vector_store %arg9[%173, %c0_56, %c0_57], %176 {strides = array<i32>} : memref<8x2x32xf32, #tpu.memory_space<vmem>>, vector<1x2x32xf32>,
    %c5_i32 = arith.constant 5 : i32
    %c2_i32_58 = arith.constant 2 : i32
    %177 = arith.muli %c5_i32, %c2_i32_58 : i32
    %178 = arith.index_cast %177 : i32 to index
    %c0_59 = arith.constant 0 : index
    %179 = vector.load %arg12[%178, %c0_59] : memref<16x128xf32, #tpu.memory_space<vmem>>, vector<2x128xf32>
    %cst_60 = arith.constant dense<0.000000e+00> : vector<2x128xf32>
    %180 = tpu.matmul %164, %11, %cst_60 {dimension_numbers = #tpu.dot_dimension_numbers<[1], [0], [0], [1], [0, 0, 1, 1], [], []>} : vector<2x32xf32>, vector<32x128xf32>, vector<2x128xf32> -> vector<2x128xf32>
    %181 = arith.addf %179, %180 : vector<2x128xf32>
    %182 = arith.negf %181 : vector<2x128xf32>
    %183 = math.exp %182 : vector<2x128xf32>
    %cst_61 = arith.constant 1.000000e+00 : f32
    %184 = vector.broadcast %cst_61 : f32 to vector<2x128xf32>
    %185 = arith.addf %184, %183 : vector<2x128xf32>
    %186 = arith.divf %184, %185 : vector<2x128xf32>
    %187 = math.tanh %181 : vector<2x128xf32>
    %188 = vector.extract_strided_slice %186 {offsets = [0, 0], sizes = [2, 32], strides = [1, 1]} : vector<2x128xf32> to vector<2x32xf32>
    %189 = vector.extract_strided_slice %186 {offsets = [0, 32], sizes = [2, 32], strides = [1, 1]} : vector<2x128xf32> to vector<2x32xf32>
    %190 = vector.extract_strided_slice %187 {offsets = [0, 64], sizes = [2, 32], strides = [1, 1]} : vector<2x128xf32> to vector<2x32xf32>
    %191 = vector.extract_strided_slice %186 {offsets = [0, 96], sizes = [2, 32], strides = [1, 1]} : vector<2x128xf32> to vector<2x32xf32>
    %192 = arith.mulf %189, %162 : vector<2x32xf32>
    %193 = arith.mulf %188, %190 : vector<2x32xf32>
    %194 = arith.addf %192, %193 : vector<2x32xf32>
    %195 = math.tanh %194 : vector<2x32xf32>
    %196 = arith.mulf %191, %195 : vector<2x32xf32>
    %197 = arith.negf %196 : vector<2x32xf32>
    %198 = math.exp %197 : vector<2x32xf32>
    %cst_62 = arith.constant 1.000000e+00 : f32
    %199 = vector.broadcast %cst_62 : f32 to vector<2x32xf32>
    %200 = arith.addf %199, %198 : vector<2x32xf32>
    %201 = arith.divf %199, %200 : vector<2x32xf32>
    %cst_63 = arith.constant 9.99999974E-6 : f32
    %202 = vector.broadcast %cst_63 : f32 to vector<2x32xf32>
    %203 = arith.addf %201, %202 : vector<2x32xf32>
    %204 = arith.select %14, %196, %203 : vector<2x32xi1>, vector<2x32xf32>
    %205 = arith.index_cast %c5_i32 : i32 to index
    %c0_64 = arith.constant 0 : index
    %c0_65 = arith.constant 0 : index
    %206 = vector.load %arg9[%205, %c0_64, %c0_65] : memref<8x2x32xf32, #tpu.memory_space<vmem>>, vector<1x2x32xf32>
    %207 = vector.shape_cast %206 : vector<1x2x32xf32> to vector<2x32xf32>
    %208 = vector.shape_cast %204 : vector<2x32xf32> to vector<1x2x32xf32>
    tpu.vector_store %arg9[%205, %c0_64, %c0_65], %208 {strides = array<i32>} : memref<8x2x32xf32, #tpu.memory_space<vmem>>, vector<1x2x32xf32>,
    %c6_i32 = arith.constant 6 : i32
    %c2_i32_66 = arith.constant 2 : i32
    %209 = arith.muli %c6_i32, %c2_i32_66 : i32
    %210 = arith.index_cast %209 : i32 to index
    %c0_67 = arith.constant 0 : index
    %211 = vector.load %arg12[%210, %c0_67] : memref<16x128xf32, #tpu.memory_space<vmem>>, vector<2x128xf32>
    %cst_68 = arith.constant dense<0.000000e+00> : vector<2x128xf32>
    %212 = tpu.matmul %196, %11, %cst_68 {dimension_numbers = #tpu.dot_dimension_numbers<[1], [0], [0], [1], [0, 0, 1, 1], [], []>} : vector<2x32xf32>, vector<32x128xf32>, vector<2x128xf32> -> vector<2x128xf32>
    %213 = arith.addf %211, %212 : vector<2x128xf32>
    %214 = arith.negf %213 : vector<2x128xf32>
    %215 = math.exp %214 : vector<2x128xf32>
    %cst_69 = arith.constant 1.000000e+00 : f32
    %216 = vector.broadcast %cst_69 : f32 to vector<2x128xf32>
    %217 = arith.addf %216, %215 : vector<2x128xf32>
    %218 = arith.divf %216, %217 : vector<2x128xf32>
    %219 = math.tanh %213 : vector<2x128xf32>
    %220 = vector.extract_strided_slice %218 {offsets = [0, 0], sizes = [2, 32], strides = [1, 1]} : vector<2x128xf32> to vector<2x32xf32>
    %221 = vector.extract_strided_slice %218 {offsets = [0, 32], sizes = [2, 32], strides = [1, 1]} : vector<2x128xf32> to vector<2x32xf32>
    %222 = vector.extract_strided_slice %219 {offsets = [0, 64], sizes = [2, 32], strides = [1, 1]} : vector<2x128xf32> to vector<2x32xf32>
    %223 = vector.extract_strided_slice %218 {offsets = [0, 96], sizes = [2, 32], strides = [1, 1]} : vector<2x128xf32> to vector<2x32xf32>
    %224 = arith.mulf %221, %194 : vector<2x32xf32>
    %225 = arith.mulf %220, %222 : vector<2x32xf32>
    %226 = arith.addf %224, %225 : vector<2x32xf32>
    %227 = math.tanh %226 : vector<2x32xf32>
    %228 = arith.mulf %223, %227 : vector<2x32xf32>
    %229 = arith.negf %228 : vector<2x32xf32>
    %230 = math.exp %229 : vector<2x32xf32>
    %cst_70 = arith.constant 1.000000e+00 : f32
    %231 = vector.broadcast %cst_70 : f32 to vector<2x32xf32>
    %232 = arith.addf %231, %230 : vector<2x32xf32>
    %233 = arith.divf %231, %232 : vector<2x32xf32>
    %cst_71 = arith.constant 9.99999974E-6 : f32
    %234 = vector.broadcast %cst_71 : f32 to vector<2x32xf32>
    %235 = arith.addf %233, %234 : vector<2x32xf32>
    %236 = arith.select %14, %228, %235 : vector<2x32xi1>, vector<2x32xf32>
    %237 = arith.index_cast %c6_i32 : i32 to index
    %c0_72 = arith.constant 0 : index
    %c0_73 = arith.constant 0 : index
    %238 = vector.load %arg9[%237, %c0_72, %c0_73] : memref<8x2x32xf32, #tpu.memory_space<vmem>>, vector<1x2x32xf32>
    %239 = vector.shape_cast %238 : vector<1x2x32xf32> to vector<2x32xf32>
    %240 = vector.shape_cast %236 : vector<2x32xf32> to vector<1x2x32xf32>
    tpu.vector_store %arg9[%237, %c0_72, %c0_73], %240 {strides = array<i32>} : memref<8x2x32xf32, #tpu.memory_space<vmem>>, vector<1x2x32xf32>,
    %c7_i32 = arith.constant 7 : i32
    %c2_i32_74 = arith.constant 2 : i32
    %241 = arith.muli %c7_i32, %c2_i32_74 : i32
    %242 = arith.index_cast %241 : i32 to index
    %c0_75 = arith.constant 0 : index
    %243 = vector.load %arg12[%242, %c0_75] : memref<16x128xf32, #tpu.memory_space<vmem>>, vector<2x128xf32>
    %cst_76 = arith.constant dense<0.000000e+00> : vector<2x128xf32>
    %244 = tpu.matmul %228, %11, %cst_76 {dimension_numbers = #tpu.dot_dimension_numbers<[1], [0], [0], [1], [0, 0, 1, 1], [], []>} : vector<2x32xf32>, vector<32x128xf32>, vector<2x128xf32> -> vector<2x128xf32>
    %245 = arith.addf %243, %244 : vector<2x128xf32>
    %246 = arith.negf %245 : vector<2x128xf32>
    %247 = math.exp %246 : vector<2x128xf32>
    %cst_77 = arith.constant 1.000000e+00 : f32
    %248 = vector.broadcast %cst_77 : f32 to vector<2x128xf32>
    %249 = arith.addf %248, %247 : vector<2x128xf32>
    %250 = arith.divf %248, %249 : vector<2x128xf32>
    %251 = math.tanh %245 : vector<2x128xf32>
    %252 = vector.extract_strided_slice %250 {offsets = [0, 0], sizes = [2, 32], strides = [1, 1]} : vector<2x128xf32> to vector<2x32xf32>
    %253 = vector.extract_strided_slice %250 {offsets = [0, 32], sizes = [2, 32], strides = [1, 1]} : vector<2x128xf32> to vector<2x32xf32>
    %254 = vector.extract_strided_slice %251 {offsets = [0, 64], sizes = [2, 32], strides = [1, 1]} : vector<2x128xf32> to vector<2x32xf32>
    %255 = vector.extract_strided_slice %250 {offsets = [0, 96], sizes = [2, 32], strides = [1, 1]} : vector<2x128xf32> to vector<2x32xf32>
    %256 = arith.mulf %253, %226 : vector<2x32xf32>
    %257 = arith.mulf %252, %254 : vector<2x32xf32>
    %258 = arith.addf %256, %257 : vector<2x32xf32>
    %259 = math.tanh %258 : vector<2x32xf32>
    %260 = arith.mulf %255, %259 : vector<2x32xf32>
    %261 = arith.negf %260 : vector<2x32xf32>
    %262 = math.exp %261 : vector<2x32xf32>
    %cst_78 = arith.constant 1.000000e+00 : f32
    %263 = vector.broadcast %cst_78 : f32 to vector<2x32xf32>
    %264 = arith.addf %263, %262 : vector<2x32xf32>
    %265 = arith.divf %263, %264 : vector<2x32xf32>
    %cst_79 = arith.constant 9.99999974E-6 : f32
    %266 = vector.broadcast %cst_79 : f32 to vector<2x32xf32>
    %267 = arith.addf %265, %266 : vector<2x32xf32>
    %268 = arith.select %14, %260, %267 : vector<2x32xi1>, vector<2x32xf32>
    %269 = arith.index_cast %c7_i32 : i32 to index
    %c0_80 = arith.constant 0 : index
    %c0_81 = arith.constant 0 : index
    %270 = vector.load %arg9[%269, %c0_80, %c0_81] : memref<8x2x32xf32, #tpu.memory_space<vmem>>, vector<1x2x32xf32>
    %271 = vector.shape_cast %270 : vector<1x2x32xf32> to vector<2x32xf32>
    %272 = vector.shape_cast %268 : vector<2x32xf32> to vector<1x2x32xf32>
    tpu.vector_store %arg9[%269, %c0_80, %c0_81], %272 {strides = array<i32>} : memref<8x2x32xf32, #tpu.memory_space<vmem>>, vector<1x2x32xf32>,
    %c8_i32 = arith.constant 8 : i32
    %c0_82 = arith.constant 0 : index
    %c0_83 = arith.constant 0 : index
    %c0_84 = arith.constant 0 : index
    %273 = vector.load %arg10[%c0_82, %c0_83, %c0_84] : memref<1x2x32xf32, #tpu.memory_space<vmem>>, vector<1x2x32xf32>
    %274 = vector.shape_cast %273 : vector<1x2x32xf32> to vector<2x32xf32>
    %275 = vector.shape_cast %260 : vector<2x32xf32> to vector<1x2x32xf32>
    tpu.vector_store %arg10[%c0_82, %c0_83, %c0_84], %275 {strides = array<i32>} : memref<1x2x32xf32, #tpu.memory_space<vmem>>, vector<1x2x32xf32>,
    %c0_85 = arith.constant 0 : index
    %c0_86 = arith.constant 0 : index
    %c0_87 = arith.constant 0 : index
    %276 = vector.load %arg11[%c0_85, %c0_86, %c0_87] : memref<1x2x32xf32, #tpu.memory_space<vmem>>, vector<1x2x32xf32>
    %277 = vector.shape_cast %276 : vector<1x2x32xf32> to vector<2x32xf32>
    %278 = vector.shape_cast %258 : vector<2x32xf32> to vector<1x2x32xf32>
    tpu.vector_store %arg11[%c0_85, %c0_86, %c0_87], %278 {strides = array<i32>} : memref<1x2x32xf32, #tpu.memory_space<vmem>>, vector<1x2x32xf32>,
    return
  }
  func.func @transform_0(%arg0: i32) -> (i32, i32) {
    %c0_i32 = arith.constant 0 : i32
    %c0_i32_0 = arith.constant 0 : i32
    %c0_i32_1 = arith.constant 0 : i32
    return %c0_i32, %c0_i32_0 : i32, i32
  }
  func.func @transform_1(%arg0: i32) -> (i32, i32) {
    %c0_i32 = arith.constant 0 : i32
    %c0_i32_0 = arith.constant 0 : i32
    %c0_i32_1 = arith.constant 0 : i32
    return %c0_i32, %c0_i32_0 : i32, i32
  }
  func.func @transform_2(%arg0: i32) -> (i32, i32) {
    %c0_i32 = arith.constant 0 : i32
    %c0_i32_0 = arith.constant 0 : i32
    %c0_i32_1 = arith.constant 0 : i32
    return %c0_i32, %c0_i32_0 : i32, i32
  }
  func.func @transform_3(%arg0: i32) -> (i32, i32) {
    %c0_i32 = arith.constant 0 : i32
    %c0_i32_0 = arith.constant 0 : i32
    %c0_i32_1 = arith.constant 0 : i32
    return %c0_i32, %c0_i32_0 : i32, i32
  }
  func.func @transform_4(%arg0: i32) -> (i32, i32) {
    %c0_i32 = arith.constant 0 : i32
    %c0_i32_0 = arith.constant 0 : i32
    %c0_i32_1 = arith.constant 0 : i32
    return %c0_i32, %c0_i32_0 : i32, i32
  }
  func.func @transform_5(%arg0: i32) -> (i32, i32) {
    %c0_i32 = arith.constant 0 : i32
    %c0_i32_0 = arith.constant 0 : i32
    %c0_i32_1 = arith.constant 0 : i32
    return %c0_i32, %c0_i32_0 : i32, i32
  }
  func.func @transform_6(%arg0: i32) -> (i32, i32) {
    %c0_i32 = arith.constant 0 : i32
    %c0_i32_0 = arith.constant 0 : i32
    %c0_i32_1 = arith.constant 0 : i32
    return %c0_i32, %c0_i32_0 : i32, i32
  }
  func.func @transform_7(%arg0: i32) -> (i32, i32) {
    %c0_i32 = arith.constant 0 : i32
    %c0_i32_0 = arith.constant 0 : i32
    %c0_i32_1 = arith.constant 0 : i32
    return %c0_i32, %c0_i32_0 : i32, i32
  }
  func.func @transform_8(%arg0: i32) -> (i32, i32, i32) {
    %c0_i32 = arith.constant 0 : i32
    %c0_i32_0 = arith.constant 0 : i32
    %c0_i32_1 = arith.constant 0 : i32
    %c0_i32_2 = arith.constant 0 : i32
    return %c0_i32, %c0_i32_0, %c0_i32_1 : i32, i32, i32
  }
  func.func @transform_9(%arg0: i32) -> (i32, i32, i32) {
    %c0_i32 = arith.constant 0 : i32
    %c0_i32_0 = arith.constant 0 : i32
    %c0_i32_1 = arith.constant 0 : i32
    %c0_i32_2 = arith.constant 0 : i32
    return %c0_i32, %c0_i32_0, %c0_i32_1 : i32, i32, i32
  }
  func.func @transform_10(%arg0: i32) -> (i32, i32, i32) {
    %c0_i32 = arith.constant 0 : i32
    %c0_i32_0 = arith.constant 0 : i32
    %c0_i32_1 = arith.constant 0 : i32
    %c0_i32_2 = arith.constant 0 : i32
    return %c0_i32, %c0_i32_0, %c0_i32_1 : i32, i32, i32
  }
}

</mosaic_0001>

<bundles_post_ra>
// kernel: tpu_custom_call.1
= control target key start
LH: loop header
LB: loop body
LE: loop exit
PB: predicated region body
PF: predicated region fallthrough
CT: control target
= control target key end

     0   :  { %16 = vsyncpa [#allocation4], 0  ;;  %s1551_s0 = inlined_call_operand.vmem [shape: f32[16,16], index: 0, kind: input, shape index: {}]   ;;  %s1552_s1 = inlined_call_operand.vmem [shape: f32[16,4], index: 1, kind: input, shape index: {}]   ;;  %s1553_s2 = inlined_call_operand.hbm [shape: f32[16,128], index: 2, kind: input, shape index: {}]   ;;  %s1554_s3 = inlined_call_operand.vmem [shape: f32[4,128], index: 3, kind: input, shape index: {}]   ;;  %s1555_s4 = inlined_call_operand.hbm [shape: f32[32,128], index: 4, kind: input, shape index: {}]   ;;  %s1556_s5 = inlined_call_operand.hbm [shape: f32[1,128], index: 5, kind: input, shape index: {}]   ;;  %s1557_s6 = inlined_call_operand.vmem [shape: f32[2,32], index: 6, kind: input, shape index: {}]   ;;  %s1558_s7 = inlined_call_operand.vmem [shape: f32[2,32], index: 7, kind: input, shape index: {}]   ;;  %s1559_s8 = inlined_call_operand.hbm [shape: f32[8,2,32], index: 8, kind: output, shape index: {0}]   ;;  %s1560_s9 = inlined_call_operand.hbm [shape: f32[1,2,32], index: 9, kind: output, shape index: {1}]   ;;  %s1561_s10 = inlined_call_operand.hbm [shape: f32[1,2,32], index: 10, kind: output, shape index: {2}]  }
   0x1   :  { %17 = vsyncpa [#allocation7], 0 }
   0x2   :  { %18 = vsyncpa [#allocation5], 0 }
   0x3   :  { %19 = vsyncpa [#allocation11], 0  ;;  %s43_s15 = sshll.u32 %s1555_s4, 4  ;;  %s1256_s16 = smov [#allocation6]   ;;  %s44_s15 = int_to_ptr.hbm [resolvable:$true] %s43_s15 }
   0x4   :  { %s45_s17 = sshll.u32 %s1256_s16, 4  ;;  %s28_s20 = sshll.u32 %s1553_s2, 4  ;;  %s46_s17 = int_to_ptr.vmem [resolvable:$true] %s45_s17  ;;  %s29_s20 = int_to_ptr.hbm [resolvable:$true] %s28_s20 }
   0x5   :  { %s1257_s21 = smov 128   ;;  %s1258_s22 = smov 8  }
   0x6   :  { %51 = dma.hbm_to_vmem [thread:$0]  %s44_s15, 512, %s46_s17, [#allocation7], %s1257_s21, %s1257_s21, %s1258_s22  }
   0x7   :  { %s1259_s23 = smov [#allocation3]   ;;  %s57_s27 = sshll.u32 %s1556_s5, 4  ;;  %s58_s27 = int_to_ptr.hbm [resolvable:$true] %s57_s27 }
   0x8   :  { %s30_s24 = sshll.u32 %s1259_s23, 4  ;;  %s1260_s4 = smov [#allocation8]   ;;  %s31_s24 = int_to_ptr.vmem [resolvable:$true] %s30_s24 }
   0x9   :  { %36 = dma.hbm_to_vmem [thread:$0]  %s29_s20, 256, %s31_s24, [#allocation4], %s1257_s21, %s1257_s21, %s1258_s22  }
   0xa   :  { %s59_s28 = sshll.u32 %s1260_s4, 4  ;;  %s60_s28 = int_to_ptr.vmem [resolvable:$true] %s59_s28 }
   0xb   :  { %62 = dma.hbm_to_vmem [thread:$0]  %s58_s27, 16, %s60_s28, [#allocation7]  }
   0xc   :  { %1248 = dma.done.wait [#allocation4], 256  }
   0xd   :  { %1249 = vsyncadd [#allocation4], 4294967040 }
   0xe   :  { %1250 = dma.done.wait [#allocation7], 528  }
   0xf   :  { %1251 = vsyncadd [#allocation7], 4294966768  ;;  %vm93_vm0 = vcmask 1043456   ;;  %vm86_vm1 = vcmask 31744   ;;  %v82_v0 = vld [vmem:[#allocation3 + $0x8] sm:$0xff]  ;;  %v81_v2 = vld [vmem:[#allocation3] sm:$0xff] }
  0x10   :  { %v85_v1 = vld [vmem:[%s1554_s3] sm:$0xf]  ;;  %141 = vmatpush.msra.mxu1 %v82_v0  ;;  %v1335_v3 = vld [vmem:[#allocation6 + $0x18] sm:$0xff]  ;;  %vm120_vm2 = vcmask 130048   ;;  %v1345_v6 = vld [vmem:[#allocation6 + $0x10] sm:$0xff]  ;;  %vm168_vm3 = vcmask 261120  }
  0x11   :  { %966 = vmatpush.msk.msra.mxu0 %vm93_vm0, %v85_v1  ;;  %v83_v4 = vld [vmem:[%s1552_s1] sm:$0xff]  ;;  %184 = vmatpush.msra.mxu2 %v1335_v3  ;;  %v1347_v7 = vld [vmem:[#allocation6 + $0x8] sm:$0xff]  ;;  %s1262_s16 = smov 32   ;;  %s935_s23 = sshll.u32 %s1560_s9, 4  ;;  %s936_s23 = int_to_ptr.hbm [resolvable:$true] %s935_s23 }
  0x12   :  { %v79_v5 = vld [vmem:[%s1551_s0] sm:$0xff]  ;;  %967 = vmatmul.msk.f32.vlgmr.msra.gmra.mxu0 %vm86_vm1, %v83_v4  ;;  %142 = vmatpush.msra.mxu1 %v81_v2  ;;  %s1265_s24 = smov [#allocation12]   ;;  %s946_s4 = sshll.u32 %s1561_s10, 4  ;;  %s947_s4 = int_to_ptr.hbm [resolvable:$true] %s946_s4 }
  0x13   :  { %280 = vmatpush.msra.mxu3 %v1335_v3  ;;  %969 = vmatmul.msk.f32.vlgmr.msra.gmra.mxu1 %vm120_vm2, %v79_v5  ;;  %v1352_v8 = vld [vmem:[#allocation6] sm:$0xff]  ;;  %s944_s25 = sshll.u32 %s1265_s24, 4  ;;  %s921_s29 = sshll.u32 %s1559_s8, 4  ;;  %s945_s25 = int_to_ptr.vmem [resolvable:$true] %s944_s25  ;;  %s922_s29 = int_to_ptr.hbm [resolvable:$true] %s921_s29 }
  0x14   :  { %185 = vmatpush.msra.mxu2 %v1345_v6  ;;  %556 = vmatpush.msrb.mxu0 %v1335_v3  ;;  %v165_v9 = vld [vmem:[%s1557_s6] sm:$0x3]  ;;  %s1261_s6 = smov 64   ;;  %s1266_s9 = smov [#allocation9]  }
  0x15   :  { %281 = vmatpush.msra.mxu3 %v1345_v6  ;;  %648 = vmatpush.msrb.mxu1 %v1335_v3  ;;  %v1383_v11 = vld [vmem:[#allocation8] ss:$0 sm:$0xff]  ;;  %s919_s5 = sshll.u32 %s1266_s9, 4  ;;  %s1267_s10 = smov 2   ;;  %s920_s5 = int_to_ptr.vmem [resolvable:$true] %s919_s5 }
  0x16   :  { %186 = vmatpush.msra.mxu2 %v1347_v7  ;;  %557 = vmatpush.msrb.mxu0 %v1345_v6  ;;  %v166_v19 = vld [vmem:[%s1558_s7] sm:$0x3] }
  0x17   :  { %282 = vmatpush.msra.mxu3 %v1347_v7  ;;  %649 = vmatpush.msrb.mxu1 %v1345_v6 }
  0x18   :  { %187 = vmatpush.msra.mxu2 %v1352_v8  ;;  %558 = vmatpush.msrb.mxu0 %v1347_v7 }
  0x19   :  { %971 = vmatmul.msk.f32.vlgmr.msra.gmra.mxu2 %vm168_vm3, %v165_v9  ;;  %283 = vmatpush.msra.mxu3 %v1352_v8 }
  0x1a   :  { %372 = vmatpush.msrb.mxu2 %v1335_v3  ;;  %650 = vmatpush.msrb.mxu1 %v1347_v7 }
  0x1b   :  { %464 = vmatpush.msrb.mxu3 %v1335_v3  ;;  %559 = vmatpush.msrb.mxu0 %v1352_v8 }
  0x1c   :  { %373 = vmatpush.msrb.mxu2 %v1345_v6  ;;  %651 = vmatpush.msrb.mxu1 %v1352_v8 }
  0x1d   :  { %465 = vmatpush.msrb.mxu3 %v1345_v6 }
  0x1e   :  { %374 = vmatpush.msrb.mxu2 %v1347_v7 }
  0x1f   :  { %466 = vmatpush.msrb.mxu3 %v1347_v7 }
  0x20   :  { %375 = vmatpush.msrb.mxu2 %v1352_v8 }
  0x21   :  { %467 = vmatpush.msrb.mxu3 %v1352_v8 }
  0x22   :  { %740 = vmatpush.msra.mxu2 %v1335_v3 }
  0x24   :  { %741 = vmatpush.msra.mxu2 %v1345_v6 }
  0x26   :  { %742 = vmatpush.msra.mxu2 %v1347_v7 }
  0x28   :  { %743 = vmatpush.msra.mxu2 %v1352_v8 }
  0x8f   :  { %v114_v10 = vpop.f32.mrf.mxu0 }
  0x90   :  { %v144_v12 = vpop.f32.mrf.mxu1 }
  0x91   :  { %v145_v13 = vadd.f32 %v144_v12, %v114_v10 }
  0x93   :  { %v154_v14 = vadd.f32 %v1383_v11, %v145_v13 }
  0x95   :  { %156 = vst [vmem:[#allocation2] sm:$0xff] %v154_v14 }
  0x9c   :  { %v189_v15 = vpop.f32.mrf.mxu2  ;;  %v167_v16 = vld [vmem:[#allocation2] sm:$0x3]  ;;  %v265_v43 = vld [vmem:[#allocation2 + $0x2] sm:$0x3]  ;;  %v357_v5 = vld [vmem:[#allocation2 + $0x4] sm:$0x3] }
  0x9d   :  { %v192_v17 = vadd.f32 %v189_v15, %v167_v16 }
  0x9f   :  { %1008 = vtanh.f32 %v192_v17  ;;  %v972_v20 = vmul.f32 -1.442695, %v192_v17 }
  0xa1   :  { %1010 = vpow2.f32 %v972_v20 }
  0xa5   :  { %v1009_v18 = vpop.eup %1008 }
  0xa6   :  { %219 = vrot.lane.b32.xlu0 %v1009_v18, %s1261_s6 }
  0xa7   :  { %v1011_v21 = vpop.eup %1010 }
  0xa8   :  { %v196_v22 = vadd.f32 1.0, %v1011_v21 }
  0xaa   :  { %1012 = vrcp.f32 %v196_v22  ;;  %v208_v28 = vand.u32 2147483648, %v196_v22  ;;  %vm202_vm5 = vweird.f32 %v196_v22  ;;  %v206_v29 = vand.u32 2147483647, %v196_v22 }
  0xac   :  { %v209_v31 = vor.u32 1.1754944e-38, %v208_v28  ;;  %vm207_vm7 = vcmp.eq.f32.partialorder %v206_v29, 8.507059e+37 }
  0xae   :  { %214 = vrot.lane.b32.xlu0 %v166_v19, %s1262_s16 }
  0xb0   :  { %v1013_v23 = vpop.eup %1012 }
  0xb1   :  { %v198_v24 = vmul.f32 %v1013_v23, %v196_v22  ;;  %vm203_vm4 = vweird.f32 %v1013_v23 }
  0xb2   :  { %vm204_vm6 = vmor %vm202_vm5, %vm203_vm4 }
  0xb3   :  { %v199_v25 = vsub.f32 1.0, %v198_v24 }
  0xb5   :  { %v200_v26 = vmul.f32 %v1013_v23, %v199_v25 }
  0xb7   :  { %v201_v27 = vadd.f32 %v1013_v23, %v200_v26 }
  0xb9   :  { %v205_v30 = vsel %vm204_vm6, %v1013_v23, %v201_v27 }
  0xba   :  { %v210_v33 = vsel %vm207_vm7, %v209_v31, %v205_v30 }
 0x118   :  { %v220_v32 = vpop.permute.xlu0 %219 }
 0x119   :  { %v222_v34 = vmul.f32 %v220_v32, %v210_v33  ;;  %v449_v32 = vld [vmem:[#allocation2 + $0x6] sm:$0x3] }
 0x11b   :  { %224 = vrot.lane.b32.xlu1 %v222_v34, %s1262_s16 }
 0x120   :  { %v215_v35 = vpop.permute.xlu0 %214 }
 0x121   :  { %v217_v36 = vmul.f32 %v215_v35, %v210_v33 }
 0x18d   :  { %v225_v37 = vpop.permute.xlu1 %224 }
 0x18e   :  { %v227_v38 = vadd.f32 %v225_v37, %v217_v36 }
 0x190   :  { %1014 = vtanh.f32 %v227_v38 }
 0x196   :  { %v1015_v39 = vpop.eup %1014 }
 0x197   :  { %230 = vrot.lane.b32.xlu1 %v1015_v39, %s1261_s6 }
 0x209   :  { %v231_v40 = vpop.permute.xlu1 %230 }
 0x20a   :  { %v1393_v41 = vmul.f32 %v231_v40, %v210_v33 }
 0x20c   :  { %255 = vrot.lane.b32.xlu2 %v1393_v41, %s1262_s16 }
 0x266   :  { %v1397_v42 = vpop.permute.xlu2 %255 }
 0x267   :  { %974 = vmatmul.msk.f32.vlgmr.msra.gmra.mxu3 %vm168_vm3, %v1397_v42 }
 0x268   :  { %832 = vmatpush.msra.mxu3 %v1335_v3 }
 0x26a   :  { %833 = vmatpush.msra.mxu3 %v1345_v6 }
 0x26c   :  { %834 = vmatpush.msra.mxu3 %v1347_v7 }
 0x26e   :  { %835 = vmatpush.msra.mxu3 %v1352_v8 }
 0x2ea   :  { %v285_v44 = vpop.f32.mrf.mxu3 }
 0x2eb   :  { %v288_v45 = vadd.f32 %v285_v44, %v265_v43 }
 0x2ed   :  { %1016 = vtanh.f32 %v288_v45  ;;  %v975_v47 = vmul.f32 -1.442695, %v288_v45 }
 0x2ef   :  { %1018 = vpow2.f32 %v975_v47 }
 0x2f3   :  { %v1017_v46 = vpop.eup %1016 }
 0x2f4   :  { %311 = vrot.lane.b32.xlu2 %v1017_v46, %s1261_s6 }
 0x2f5   :  { %v1019_v48 = vpop.eup %1018 }
 0x2f6   :  { %v292_v49 = vadd.f32 1.0, %v1019_v48 }
 0x2f8   :  { %1020 = vrcp.f32 %v292_v49  ;;  %v304_v55 = vand.u32 2147483648, %v292_v49  ;;  %vm298_vm9 = vweird.f32 %v292_v49  ;;  %v302_v56 = vand.u32 2147483647, %v292_v49 }
 0x2fa   :  { %v305_v58 = vor.u32 1.1754944e-38, %v304_v55  ;;  %vm303_vm11 = vcmp.eq.f32.partialorder %v302_v56, 8.507059e+37 }
 0x2fe   :  { %v1021_v50 = vpop.eup %1020 }
 0x2ff   :  { %v294_v51 = vmul.f32 %v1021_v50, %v292_v49  ;;  %vm299_vm8 = vweird.f32 %v1021_v50 }
 0x300   :  { %vm300_vm10 = vmor %vm298_vm9, %vm299_vm8 }
 0x301   :  { %v295_v52 = vsub.f32 1.0, %v294_v51 }
 0x303   :  { %v296_v53 = vmul.f32 %v1021_v50, %v295_v52 }
 0x305   :  { %v297_v54 = vadd.f32 %v1021_v50, %v296_v53 }
 0x307   :  { %v301_v57 = vsel %vm300_vm10, %v1021_v50, %v297_v54 }
 0x308   :  { %v306_v60 = vsel %vm303_vm11, %v305_v58, %v301_v57  ;;  %v84_v57 = vld [vmem:[%s1552_s1 + $0x8] sm:$0xff]  ;;  %s1264_s1 = smov [#allocation10]  }
 0x309   :  { %v309_v62 = vmul.f32 %v306_v60, %v227_v38  ;;  %v80_v58 = vld [vmem:[%s1551_s0 + $0x8] sm:$0xff]  ;;  %968 = vmatmul.msk.f32.gmra.mxu0 %vm86_vm1, %v84_v57  ;;  %s1263_s0 = smov 96   ;;  %s933_s20 = sshll.u32 %s1264_s1, 4  ;;  %s934_s20 = int_to_ptr.vmem [resolvable:$true] %s933_s20 }
 0x30a   :  { %970 = vmatmul.msk.f32.gmra.mxu1 %vm120_vm2, %v80_v58 }
 0x34e   :  { %v312_v59 = vpop.permute.xlu2 %311 }
 0x34f   :  { %v314_v61 = vmul.f32 %v312_v59, %v306_v60 }
 0x351   :  { %316 = vrot.lane.b32.xlu0 %v314_v61, %s1262_s16 }
 0x386   :  { %v117_v61 = vpop.f32.mrf.mxu0 }
 0x3c3   :  { %v317_v63 = vpop.permute.xlu0 %316 }
 0x3c4   :  { %v319_v0 = vadd.f32 %v317_v63, %v309_v62  ;;  %v147_v62 = vpop.f32.mrf.mxu1 }
 0x3c5   :  { %v148_v63 = vadd.f32 %v147_v62, %v117_v61 }
 0x3c6   :  { %1022 = vtanh.f32 %v319_v0 }
 0x3cc   :  { %v1023_v1 = vpop.eup %1022 }
 0x3cd   :  { %322 = vrot.lane.b32.xlu1 %v1023_v1, %s1261_s6 }
 0x43f   :  { %v323_v2 = vpop.permute.xlu1 %322 }
 0x440   :  { %v1408_v3 = vmul.f32 %v323_v2, %v306_v60 }
 0x442   :  { %347 = vrot.lane.b32.xlu2 %v1408_v3, %s1262_s16 }
 0x49c   :  { %v1412_v4 = vpop.permute.xlu2 %347 }
 0x49d   :  { %977 = vmatmul.msk.f32.vlgmr.msrb.gmra.mxu2 %vm168_vm3, %v1412_v4 }
 0x520   :  { %v377_v6 = vpop.f32.mrf.mxu2 }
 0x521   :  { %v380_v7 = vadd.f32 %v377_v6, %v357_v5 }
 0x523   :  { %1024 = vtanh.f32 %v380_v7  ;;  %v978_v9 = vmul.f32 -1.442695, %v380_v7 }
 0x525   :  { %1026 = vpow2.f32 %v978_v9 }
 0x529   :  { %v1025_v8 = vpop.eup %1024 }
 0x52a   :  { %403 = vrot.lane.b32.xlu0 %v1025_v8, %s1261_s6 }
 0x52b   :  { %v1027_v10 = vpop.eup %1026 }
 0x52c   :  { %v384_v12 = vadd.f32 1.0, %v1027_v10 }
 0x52e   :  { %1028 = vrcp.f32 %v384_v12  ;;  %v396_v18 = vand.u32 2147483648, %v384_v12  ;;  %vm390_vm13 = vweird.f32 %v384_v12  ;;  %v394_v19 = vand.u32 2147483647, %v384_v12 }
 0x530   :  { %v397_v21 = vor.u32 1.1754944e-38, %v396_v18  ;;  %vm395_vm15 = vcmp.eq.f32.partialorder %v394_v19, 8.507059e+37 }
 0x534   :  { %v1029_v13 = vpop.eup %1028 }
 0x535   :  { %v386_v14 = vmul.f32 %v1029_v13, %v384_v12  ;;  %vm391_vm12 = vweird.f32 %v1029_v13 }
 0x536   :  { %vm392_vm14 = vmor %vm390_vm13, %vm391_vm12 }
 0x537   :  { %v387_v15 = vsub.f32 1.0, %v386_v14 }
 0x539   :  { %v388_v16 = vmul.f32 %v1029_v13, %v387_v15 }
 0x53b   :  { %v389_v17 = vadd.f32 %v1029_v13, %v388_v16 }
 0x53d   :  { %v393_v20 = vsel %vm392_vm14, %v1029_v13, %v389_v17 }
 0x53e   :  { %v398_v23 = vsel %vm395_vm15, %v397_v21, %v393_v20 }
 0x53f   :  { %v401_v25 = vmul.f32 %v398_v23, %v319_v0  ;;  %v155_v0 = vadd.f32 %v1383_v11, %v148_v63 }
 0x541   :  { %157 = vst [vmem:[#allocation2 + $0x8] sm:$0xff] %v155_v0 }
 0x548   :  { %v541_v2 = vld [vmem:[#allocation2 + $0x8] sm:$0x3]  ;;  %v725_v61 = vld [vmem:[#allocation2 + $0xc] sm:$0x3] }
 0x59c   :  { %v404_v22 = vpop.permute.xlu0 %403 }
 0x59d   :  { %v406_v24 = vmul.f32 %v404_v22, %v398_v23 }
 0x59f   :  { %408 = vrot.lane.b32.xlu1 %v406_v24, %s1262_s16 }
 0x611   :  { %v409_v26 = vpop.permute.xlu1 %408 }
 0x612   :  { %v411_v27 = vadd.f32 %v409_v26, %v401_v25 }
 0x614   :  { %1030 = vtanh.f32 %v411_v27 }
 0x61a   :  { %v1031_v28 = vpop.eup %1030 }
 0x61b   :  { %414 = vrot.lane.b32.xlu2 %v1031_v28, %s1261_s6 }
 0x675   :  { %v415_v29 = vpop.permute.xlu2 %414 }
 0x676   :  { %v1419_v30 = vmul.f32 %v415_v29, %v398_v23 }
 0x678   :  { %439 = vrot.lane.b32.xlu0 %v1419_v30, %s1262_s16 }
 0x6ea   :  { %v1423_v31 = vpop.permute.xlu0 %439 }
 0x6eb   :  { %980 = vmatmul.msk.f32.vlgmr.msrb.gmra.mxu3 %vm168_vm3, %v1423_v31 }
 0x76e   :  { %v469_v33 = vpop.f32.mrf.mxu3 }
 0x76f   :  { %v472_v34 = vadd.f32 %v469_v33, %v449_v32  ;;  %v633_v32 = vld [vmem:[#allocation2 + $0xa] sm:$0x3] }
 0x771   :  { %1032 = vtanh.f32 %v472_v34  ;;  %v981_v36 = vmul.f32 -1.442695, %v472_v34 }
 0x773   :  { %1034 = vpow2.f32 %v981_v36 }
 0x777   :  { %v1033_v35 = vpop.eup %1032 }
 0x778   :  { %495 = vrot.lane.b32.xlu1 %v1033_v35, %s1261_s6 }
 0x779   :  { %v1035_v37 = vpop.eup %1034 }
 0x77a   :  { %v476_v38 = vadd.f32 1.0, %v1035_v37 }
 0x77c   :  { %1036 = vrcp.f32 %v476_v38  ;;  %v488_v46 = vand.u32 2147483648, %v476_v38  ;;  %vm482_vm4 = vweird.f32 %v476_v38  ;;  %v486_v47 = vand.u32 2147483647, %v476_v38 }
 0x77e   :  { %v489_v49 = vor.u32 1.1754944e-38, %v488_v46  ;;  %vm487_vm6 = vcmp.eq.f32.partialorder %v486_v47, 8.507059e+37 }
 0x782   :  { %v1037_v39 = vpop.eup %1036 }
 0x783   :  { %v478_v40 = vmul.f32 %v1037_v39, %v476_v38  ;;  %vm483_vm0 = vweird.f32 %v1037_v39 }
 0x784   :  { %vm484_vm5 = vmor %vm482_vm4, %vm483_vm0 }
 0x785   :  { %v479_v43 = vsub.f32 1.0, %v478_v40 }
 0x787   :  { %v480_v44 = vmul.f32 %v1037_v39, %v479_v43 }
 0x789   :  { %v481_v45 = vadd.f32 %v1037_v39, %v480_v44 }
 0x78b   :  { %v485_v48 = vsel %vm484_vm5, %v1037_v39, %v481_v45 }
 0x78c   :  { %v490_v51 = vsel %vm487_vm6, %v489_v49, %v485_v48 }
 0x78d   :  { %v493_v53 = vmul.f32 %v490_v51, %v411_v27 }
 0x7ea   :  { %v496_v50 = vpop.permute.xlu1 %495 }
 0x7eb   :  { %v498_v52 = vmul.f32 %v496_v50, %v490_v51 }
 0x7ed   :  { %500 = vrot.lane.b32.xlu2 %v498_v52, %s1262_s16 }
 0x847   :  { %v501_v54 = vpop.permute.xlu2 %500 }
 0x848   :  { %v503_v55 = vadd.f32 %v501_v54, %v493_v53 }
 0x84a   :  { %1038 = vtanh.f32 %v503_v55 }
 0x850   :  { %v1039_v56 = vpop.eup %1038 }
 0x851   :  { %506 = vrot.lane.b32.xlu0 %v1039_v56, %s1261_s6 }
 0x8c3   :  { %v507_v59 = vpop.permute.xlu0 %506 }
 0x8c4   :  { %v1438_v60 = vmul.f32 %v507_v59, %v490_v51 }
 0x8c6   :  { %531 = vrot.lane.b32.xlu1 %v1438_v60, %s1262_s16 }
 0x938   :  { %v1443_v1 = vpop.permute.xlu1 %531 }
 0x939   :  { %983 = vmatmul.msk.f32.vlgmr.msrb.gmra.mxu0 %vm168_vm3, %v1443_v1 }
 0x9b6   :  { %v561_v5 = vpop.f32.mrf.mxu0 }
 0x9b7   :  { %v564_v6 = vadd.f32 %v561_v5, %v541_v2 }
 0x9b9   :  { %1040 = vtanh.f32 %v564_v6  ;;  %v984_v8 = vmul.f32 -1.442695, %v564_v6 }
 0x9bb   :  { %1042 = vpow2.f32 %v984_v8 }
 0x9bf   :  { %v1041_v7 = vpop.eup %1040 }
 0x9c0   :  { %587 = vrot.lane.b32.xlu2 %v1041_v7, %s1261_s6 }
 0x9c1   :  { %v1043_v9 = vpop.eup %1042 }
 0x9c2   :  { %v568_v10 = vadd.f32 1.0, %v1043_v9 }
 0x9c4   :  { %1044 = vrcp.f32 %v568_v10  ;;  %v580_v16 = vand.u32 2147483648, %v568_v10  ;;  %vm574_vm2 = vweird.f32 %v568_v10  ;;  %v578_v17 = vand.u32 2147483647, %v568_v10 }
 0x9c6   :  { %v581_v19 = vor.u32 1.1754944e-38, %v580_v16  ;;  %vm579_vm8 = vcmp.eq.f32.partialorder %v578_v17, 8.507059e+37 }
 0x9ca   :  { %v1045_v12 = vpop.eup %1044 }
 0x9cb   :  { %v570_v11 = vmul.f32 %v1045_v12, %v568_v10  ;;  %vm575_vm1 = vweird.f32 %v1045_v12 }
 0x9cc   :  { %vm576_vm7 = vmor %vm574_vm2, %vm575_vm1 }
 0x9cd   :  { %v571_v13 = vsub.f32 1.0, %v570_v11 }
 0x9cf   :  { %v572_v14 = vmul.f32 %v1045_v12, %v571_v13 }
 0x9d1   :  { %v573_v15 = vadd.f32 %v1045_v12, %v572_v14 }
 0x9d3   :  { %v577_v18 = vsel %vm576_vm7, %v1045_v12, %v573_v15 }
 0x9d4   :  { %v582_v21 = vsel %vm579_vm8, %v581_v19, %v577_v18 }
 0x9d5   :  { %v585_v23 = vmul.f32 %v582_v21, %v503_v55 }
 0xa1a   :  { %v588_v20 = vpop.permute.xlu2 %587 }
 0xa1b   :  { %v590_v22 = vmul.f32 %v588_v20, %v582_v21 }
 0xa1d   :  { %592 = vrot.lane.b32.xlu0 %v590_v22, %s1262_s16 }
 0xa8f   :  { %v593_v24 = vpop.permute.xlu0 %592 }
 0xa90   :  { %v595_v25 = vadd.f32 %v593_v24, %v585_v23 }
 0xa92   :  { %1046 = vtanh.f32 %v595_v25 }
 0xa98   :  { %v1047_v26 = vpop.eup %1046 }
 0xa99   :  { %598 = vrot.lane.b32.xlu1 %v1047_v26, %s1261_s6  ;;  %v973_v26 = vmul.f32 -1.442695, %v1393_v41 }
 0xb0b   :  { %v599_v27 = vpop.permute.xlu1 %598 }
 0xb0c   :  { %v1450_v28 = vmul.f32 %v599_v27, %v582_v21  ;;  %v982_v27 = vmul.f32 -1.442695, %v1438_v60 }
 0xb0e   :  { %623 = vrot.lane.b32.xlu2 %v1450_v28, %s1262_s16 }
 0xb68   :  { %v1454_v29 = vpop.permute.xlu2 %623 }
 0xb69   :  { %986 = vmatmul.msk.f32.vlgmr.msrb.gmra.mxu1 %vm168_vm3, %v1454_v29 }
 0xbe6   :  { %v653_v33 = vpop.f32.mrf.mxu1 }
 0xbe7   :  { %v656_v34 = vadd.f32 %v653_v33, %v633_v32 }
 0xbe9   :  { %1048 = vtanh.f32 %v656_v34  ;;  %v987_v36 = vmul.f32 -1.442695, %v656_v34 }
 0xbeb   :  { %1050 = vpow2.f32 %v987_v36 }
 0xbef   :  { %v1049_v35 = vpop.eup %1048 }
 0xbf0   :  { %679 = vrot.lane.b32.xlu0 %v1049_v35, %s1261_s6 }
 0xbf1   :  { %v1051_v37 = vpop.eup %1050 }
 0xbf2   :  { %v660_v38 = vadd.f32 1.0, %v1051_v37 }
 0xbf4   :  { %1052 = vrcp.f32 %v660_v38  ;;  %v672_v46 = vand.u32 2147483648, %v660_v38  ;;  %vm666_vm10 = vweird.f32 %v660_v38  ;;  %v670_v47 = vand.u32 2147483647, %v660_v38 }
 0xbf6   :  { %v673_v49 = vor.u32 1.1754944e-38, %v672_v46  ;;  %vm671_vm12 = vcmp.eq.f32.partialorder %v670_v47, 8.507059e+37 }
 0xbfa   :  { %v1053_v39 = vpop.eup %1052 }
 0xbfb   :  { %v662_v40 = vmul.f32 %v1053_v39, %v660_v38  ;;  %vm667_vm9 = vweird.f32 %v1053_v39 }
 0xbfc   :  { %vm668_vm11 = vmor %vm666_vm10, %vm667_vm9 }
 0xbfd   :  { %v663_v43 = vsub.f32 1.0, %v662_v40 }
 0xbff   :  { %v664_v44 = vmul.f32 %v1053_v39, %v663_v43 }
 0xc01   :  { %v665_v45 = vadd.f32 %v1053_v39, %v664_v44 }
 0xc03   :  { %v669_v48 = vsel %vm668_vm11, %v1053_v39, %v665_v45  ;;  %v817_v45 = vld [vmem:[#allocation2 + $0xe] sm:$0x3] }
 0xc04   :  { %v674_v51 = vsel %vm671_vm12, %v673_v49, %v669_v48 }
 0xc05   :  { %v677_v53 = vmul.f32 %v674_v51, %v595_v25 }
 0xc62   :  { %v680_v50 = vpop.permute.xlu0 %679 }
 0xc63   :  { %v682_v52 = vmul.f32 %v680_v50, %v674_v51 }
 0xc65   :  { %684 = vrot.lane.b32.xlu1 %v682_v52, %s1262_s16 }
 0xcd7   :  { %v685_v54 = vpop.permute.xlu1 %684 }
 0xcd8   :  { %v687_v55 = vadd.f32 %v685_v54, %v677_v53 }
 0xcda   :  { %1054 = vtanh.f32 %v687_v55 }
 0xce0   :  { %v1055_v56 = vpop.eup %1054 }
 0xce1   :  { %690 = vrot.lane.b32.xlu2 %v1055_v56, %s1261_s6 }
 0xd3b   :  { %v691_v57 = vpop.permute.xlu2 %690 }
 0xd3c   :  { %v1461_v58 = vmul.f32 %v691_v57, %v674_v51 }
 0xd3e   :  { %715 = vrot.lane.b32.xlu0 %v1461_v58, %s1262_s16 }
 0xdb0   :  { %v1465_v59 = vpop.permute.xlu0 %715 }
 0xdb1   :  { %989 = vmatmul.msk.f32.vlgmr.msra.gmra.mxu2 %vm168_vm3, %v1465_v59 }
 0xe34   :  { %v745_v62 = vpop.f32.mrf.mxu2 }
 0xe35   :  { %v748_v63 = vadd.f32 %v745_v62, %v725_v61 }
 0xe37   :  { %1056 = vtanh.f32 %v748_v63  ;;  %v990_v2 = vmul.f32 -1.442695, %v748_v63 }
 0xe39   :  { %1058 = vpow2.f32 %v990_v2 }
 0xe3d   :  { %v1057_v0 = vpop.eup %1056 }
 0xe3e   :  { %771 = vrot.lane.b32.xlu1 %v1057_v0, %s1261_s6 }
 0xe3f   :  { %v1059_v5 = vpop.eup %1058 }
 0xe40   :  { %v752_v6 = vadd.f32 1.0, %v1059_v5 }
 0xe42   :  { %1060 = vrcp.f32 %v752_v6  ;;  %v764_v11 = vand.u32 2147483648, %v752_v6  ;;  %vm758_vm14 = vweird.f32 %v752_v6  ;;  %v762_v13 = vand.u32 2147483647, %v752_v6 }
 0xe44   :  { %v765_v15 = vor.u32 1.1754944e-38, %v764_v11  ;;  %vm763_vm0 = vcmp.eq.f32.partialorder %v762_v13, 8.507059e+37 }
 0xe48   :  { %v1061_v7 = vpop.eup %1060 }
 0xe49   :  { %v754_v8 = vmul.f32 %v1061_v7, %v752_v6  ;;  %vm759_vm13 = vweird.f32 %v1061_v7 }
 0xe4a   :  { %vm760_vm15 = vmor %vm758_vm14, %vm759_vm13 }
 0xe4b   :  { %v755_v9 = vsub.f32 1.0, %v754_v8 }
 0xe4d   :  { %v756_v10 = vmul.f32 %v1061_v7, %v755_v9 }
 0xe4f   :  { %v757_v12 = vadd.f32 %v1061_v7, %v756_v10 }
 0xe51   :  { %v761_v14 = vsel %vm760_vm15, %v1061_v7, %v757_v12 }
 0xe52   :  { %v766_v17 = vsel %vm763_vm0, %v765_v15, %v761_v14 }
 0xe53   :  { %v769_v19 = vmul.f32 %v766_v17, %v687_v55 }
 0xeb0   :  { %v772_v16 = vpop.permute.xlu1 %771 }
 0xeb1   :  { %v774_v18 = vmul.f32 %v772_v16, %v766_v17 }
 0xeb3   :  { %776 = vrot.lane.b32.xlu2 %v774_v18, %s1262_s16 }
 0xf0d   :  { %v777_v20 = vpop.permute.xlu2 %776 }
 0xf0e   :  { %v1471_v21 = vadd.f32 %v777_v20, %v769_v19  ;;  %v976_v19 = vmul.f32 -1.442695, %v1408_v3 }
 0xf10   :  { %1062 = vtanh.f32 %v1471_v21 }
 0xf11   :  { %1064 = vpow2.f32 %v973_v26 }
 0xf12   :  { %1066 = vpow2.f32 %v982_v27 }
 0xf16   :  { %v1063_v22 = vpop.eup %1062 }
 0xf17   :  { %782 = vrot.lane.b32.xlu0 %v1063_v22, %s1261_s6  ;;  %v1065_v32 = vpop.eup %1064 }
 0xf18   :  { %v237_v33 = vadd.f32 1.0, %v1065_v32  ;;  %v1067_v35 = vpop.eup %1066 }
 0xf19   :  { %v513_v36 = vadd.f32 1.0, %v1067_v35 }
 0xf1a   :  { %1068 = vrcp.f32 %v237_v33  ;;  %v249_v51 = vand.u32 2147483648, %v237_v33  ;;  %vm243_vm4 = vweird.f32 %v237_v33  ;;  %v247_v52 = vand.u32 2147483647, %v237_v33 }
 0xf1b   :  { %v525_v0 = vand.u32 2147483648, %v513_v36  ;;  %vm519_vm2 = vweird.f32 %v513_v36  ;;  %v523_v5 = vand.u32 2147483647, %v513_v36 }
 0xf1c   :  { %v250_v57 = vor.u32 1.1754944e-38, %v249_v51  ;;  %vm248_vm6 = vcmp.eq.f32.partialorder %v247_v52, 8.507059e+37 }
 0xf1d   :  { %v526_v8 = vor.u32 1.1754944e-38, %v525_v0  ;;  %vm524_vm8 = vcmp.eq.f32.partialorder %v523_v5, 8.507059e+37 }
 0xf20   :  { %v1069_v37 = vpop.eup %1068 }
 0xf21   :  { %v239_v39 = vmul.f32 %v1069_v37, %v237_v33 }
 0xf23   :  { %v240_v43 = vsub.f32 1.0, %v239_v39 }
 0xf25   :  { %v241_v60 = vmul.f32 %v1069_v37, %v240_v43 }
 0xf27   :  { %v242_v48 = vadd.f32 %v1069_v37, %v241_v60  ;;  %v162_v60 = vlaneseq }
 0xf89   :  { %v783_v23 = vpop.permute.xlu0 %782 }
 0xf8a   :  { %v785_v24 = vmul.f32 %v783_v23, %v766_v17  ;;  %v985_v23 = vmul.f32 -1.442695, %v1450_v28 }
 0xf8c   :  { %807 = vrot.lane.b32.xlu1 %v785_v24, %s1262_s16  ;;  %v991_v34 = vmul.f32 -1.442695, %v785_v24 }
 0xf8e   :  { %1070 = vpow2.f32 %v991_v34 }
 0xf8f   :  { %1072 = vrcp.f32 %v513_v36 }
 0xf94   :  { %v1071_v38 = vpop.eup %1070 }
 0xf95   :  { %v789_v40 = vadd.f32 1.0, %v1071_v38  ;;  %v1073_v44 = vpop.eup %1072 }
 0xf96   :  { %v515_v47 = vmul.f32 %v1073_v44, %v513_v36  ;;  %vm520_vm1 = vweird.f32 %v1073_v44 }
 0xf97   :  { %1074 = vrcp.f32 %v789_v40  ;;  %vm521_vm7 = vmor %vm519_vm2, %vm520_vm1  ;;  %v801_v12 = vand.u32 2147483648, %v789_v40  ;;  %vm795_vm10 = vweird.f32 %v789_v40  ;;  %v799_v13 = vand.u32 2147483647, %v789_v40 }
 0xf98   :  { %v516_v49 = vsub.f32 1.0, %v515_v47  ;;  %vm263_vm2 = vcmask 254976  }
 0xf99   :  { %v802_v15 = vor.u32 1.1754944e-38, %v801_v12  ;;  %vm800_vm12 = vcmp.eq.f32.partialorder %v799_v13, 8.507059e+37 }
 0xf9a   :  { %v517_v55 = vmul.f32 %v1073_v44, %v516_v49 }
 0xf9c   :  { %v518_v62 = vadd.f32 %v1073_v44, %v517_v55 }
 0xf9d   :  { %v1075_v50 = vpop.eup %1074 }
 0xf9e   :  { %v791_v56 = vmul.f32 %v1075_v50, %v789_v40  ;;  %v522_v6 = vsel %vm521_vm7, %v1073_v44, %v518_v62  ;;  %vm796_vm9 = vweird.f32 %v1075_v50 }
 0xf9f   :  { %v527_v9 = vsel %vm524_vm8, %v526_v8, %v522_v6  ;;  %vm797_vm11 = vmor %vm795_vm10, %vm796_vm9 }
 0xfa0   :  { %v792_v63 = vsub.f32 1.0, %v791_v56  ;;  %v529_v11 = vadd.f32 1e-05, %v527_v9 }
 0xfa2   :  { %v793_v7 = vmul.f32 %v1075_v50, %v792_v63 }
 0xfa4   :  { %v794_v10 = vadd.f32 %v1075_v50, %v793_v7 }
 0xfa6   :  { %v798_v14 = vsel %vm797_vm11, %v1075_v50, %v794_v10 }
 0xfa7   :  { %v803_v16 = vsel %vm800_vm12, %v802_v15, %v798_v14  ;;  %v979_v14 = vmul.f32 -1.442695, %v1419_v30  ;;  %v988_v15 = vmul.f32 -1.442695, %v1461_v58 }
 0xfa8   :  { %v805_v17 = vadd.f32 1e-05, %v803_v16 }
 0xffe   :  { %v1476_v25 = vpop.permute.xlu1 %807 }
 0xfff   :  { %992 = vmatmul.msk.f32.vlgmr.msra.gmra.mxu3 %vm168_vm3, %v1476_v25  ;;  %vm244_vm3 = vweird.f32 %v1069_v37 }
0x1000   :  { %vm245_vm5 = vmor %vm243_vm4, %vm244_vm3 }
0x1001   :  { %v246_v54 = vsel %vm245_vm5, %v1069_v37, %v242_v48 }
0x1002   :  { %v251_v61 = vsel %vm248_vm6, %v250_v57, %v246_v54  ;;  %v1491_v54 = vand.u32 127, %v162_v60 }
0x1003   :  { %v253_v2 = vadd.f32 1e-05, %v251_v61 }
0x1004   :  { %vm164_vm1 = vcmp.lt.s32.totalorder %v1491_v54, 16 }
0x1082   :  { %v837_v41 = vpop.f32.mrf.mxu3 }
0x1083   :  { %v840_v46 = vadd.f32 %v837_v41, %v817_v45 }
0x1085   :  { %1076 = vtanh.f32 %v840_v46  ;;  %v993_v18 = vmul.f32 -1.442695, %v840_v46 }
0x1087   :  { %1078 = vpow2.f32 %v993_v18 }
0x1088   :  { %1080 = vpow2.f32 %v976_v19 }
0x108b   :  { %v1077_v53 = vpop.eup %1076 }
0x108c   :  { %863 = vrot.lane.b32.xlu2 %v1077_v53, %s1261_s6 }
0x108d   :  { %v1079_v20 = vpop.eup %1078 }
0x108e   :  { %v844_v22 = vadd.f32 1.0, %v1079_v20  ;;  %v1081_v24 = vpop.eup %1080 }
0x108f   :  { %v329_v26 = vadd.f32 1.0, %v1081_v24 }
0x1090   :  { %1082 = vrcp.f32 %v844_v22  ;;  %v856_v43 = vand.u32 2147483648, %v844_v22  ;;  %vm850_vm14 = vweird.f32 %v844_v22  ;;  %v854_v28 = vand.u32 2147483647, %v844_v22 }
0x1091   :  { %1084 = vpow2.f32 %v985_v23  ;;  %v341_v51 = vand.u32 2147483648, %v329_v26  ;;  %vm335_vm4 = vweird.f32 %v329_v26  ;;  %v339_v53 = vand.u32 2147483647, %v329_v26 }
0x1092   :  { %1086 = vrcp.f32 %v329_v26  ;;  %v857_v46 = vor.u32 1.1754944e-38, %v856_v43  ;;  %vm855_vm0 = vcmp.eq.f32.partialorder %v854_v28, 8.507059e+37 }
0x1093   :  { %v342_v57 = vor.u32 1.1754944e-38, %v341_v51  ;;  %vm340_vm6 = vcmp.eq.f32.partialorder %v339_v53, 8.507059e+37 }
0x1094   :  { %259 = vrot.lane.b32.xlu2 %v253_v2, %s1262_s16 }
0x1096   :  { %v1083_v27 = vpop.eup %1082 }
0x1097   :  { %v1085_v32 = vpop.eup %1084  ;;  %v846_v33 = vmul.f32 %v1083_v27, %v844_v22  ;;  %vm851_vm13 = vweird.f32 %v1083_v27 }
0x1098   :  { %v605_v34 = vadd.f32 1.0, %v1085_v32  ;;  %v1087_v35 = vpop.eup %1086  ;;  %vm852_vm15 = vmor %vm850_vm14, %vm851_vm13 }
0x1099   :  { %v847_v36 = vsub.f32 1.0, %v846_v33  ;;  %v331_v37 = vmul.f32 %v1087_v35, %v329_v26  ;;  %vm336_vm3 = vweird.f32 %v1087_v35 }
0x109a   :  { %1088 = vrcp.f32 %v605_v34  ;;  %vm337_vm5 = vmor %vm335_vm4, %vm336_vm3  ;;  %v617_v0 = vand.u32 2147483648, %v605_v34  ;;  %vm611_vm8 = vweird.f32 %v605_v34  ;;  %v615_v6 = vand.u32 2147483647, %v605_v34 }
0x109b   :  { %v848_v38 = vmul.f32 %v1083_v27, %v847_v36  ;;  %v332_v3 = vsub.f32 1.0, %v331_v37  ;;  %1090 = vpow2.f32 %v979_v14 }
0x109c   :  { %535 = vrot.lane.b32.xlu2 %v529_v11, %s1262_s16  ;;  %v618_v8 = vor.u32 1.1754944e-38, %v617_v0  ;;  %vm616_vm10 = vcmp.eq.f32.partialorder %v615_v6, 8.507059e+37  ;;  %1092 = vpow2.f32 %v988_v15 }
0x109d   :  { %v849_v40 = vadd.f32 %v1083_v27, %v848_v38  ;;  %v333_v44 = vmul.f32 %v1087_v35, %v332_v3 }
0x109f   :  { %v853_v41 = vsel %vm852_vm15, %v1083_v27, %v849_v40  ;;  %v334_v47 = vadd.f32 %v1087_v35, %v333_v44 }
0x10a0   :  { %v1089_v39 = vpop.eup %1088  ;;  %v1488_v50 = vsel %vm855_vm0, %v857_v46, %v853_v41 }
0x10a1   :  { %v607_v45 = vmul.f32 %v1089_v39, %v605_v34  ;;  %v338_v55 = vsel %vm337_vm5, %v1087_v35, %v334_v47  ;;  %vm612_vm7 = vweird.f32 %v1089_v39  ;;  %v1091_v16 = vpop.eup %1090 }
0x10a2   :  { %v343_v61 = vsel %vm340_vm6, %v342_v57, %v338_v55  ;;  %vm613_vm9 = vmor %vm611_vm8, %vm612_vm7 }
0x10a3   :  { %v608_v48 = vsub.f32 1.0, %v607_v45  ;;  %v345_v5 = vadd.f32 1e-05, %v343_v61 }
0x10a4   :  { %811 = vrot.lane.b32.xlu2 %v805_v17, %s1262_s16  ;;  %v1093_v17 = vpop.eup %1092 }
0x10a5   :  { %v609_v56 = vmul.f32 %v1089_v39, %v608_v48  ;;  %v697_v18 = vadd.f32 1.0, %v1093_v17 }
0x10a7   :  { %v610_v62 = vadd.f32 %v1089_v39, %v609_v56  ;;  %v709_v43 = vand.u32 2147483648, %v697_v18  ;;  %vm703_vm0 = vweird.f32 %v697_v18  ;;  %v707_v45 = vand.u32 2147483647, %v697_v18 }
0x10a9   :  { %v614_v7 = vsel %vm613_vm9, %v1089_v39, %v610_v62  ;;  %v710_v46 = vor.u32 1.1754944e-38, %v709_v43  ;;  %vm708_vm4 = vcmp.eq.f32.partialorder %v707_v45, 8.507059e+37 }
0x10aa   :  { %v619_v9 = vsel %vm616_vm10, %v618_v8, %v614_v7 }
0x10ab   :  { %v621_v11 = vadd.f32 1e-05, %v619_v9 }
0x10e6   :  { %v864_v49 = vpop.permute.xlu2 %863 }
0x10e7   :  { %v866_v52 = vmul.f32 %v864_v49, %v1488_v50 }
0x10e9   :  { %868 = vrot.lane.b32.xlu0 %v866_v52, %s1262_s16 }
0x10ee   :  { %v260_v63 = vpop.permute.xlu2 %259 }
0x10ef   :  { %v262_v2 = vsel %vm164_vm1, %v1397_v42, %v260_v63 }
0x10f0   :  { %264 = vst.msk [vmem:[#allocation9] sm:$0x3] %vm263_vm2, %v262_v2 }
0x10f1   :  { %351 = vrot.lane.b32.xlu0 %v345_v5, %s1262_s16 }
0x10f6   :  { %v536_v10 = vpop.permute.xlu2 %535 }
0x10f7   :  { %v538_v12 = vsel %vm164_vm1, %v1443_v1, %v536_v10  ;;  %v421_v1 = vadd.f32 1.0, %v1091_v16 }
0x10f8   :  { %540 = vst.msk [vmem:[#allocation9 + $0x6] sm:$0x3] %vm263_vm2, %v538_v12 }
0x10f9   :  { %627 = vrot.lane.b32.xlu0 %v621_v11, %s1262_s16  ;;  %1094 = vrcp.f32 %v421_v1  ;;  %v433_v33 = vand.u32 2147483648, %v421_v1  ;;  %vm427_vm12 = vweird.f32 %v421_v1  ;;  %v431_v35 = vand.u32 2147483647, %v421_v1 }
0x10fa   :  { %1096 = vrcp.f32 %v697_v18 }
0x10fb   :  { %v434_v3 = vor.u32 1.1754944e-38, %v433_v33  ;;  %vm432_vm14 = vcmp.eq.f32.partialorder %v431_v35, 8.507059e+37 }
0x10fe   :  { %v812_v42 = vpop.permute.xlu2 %811 }
0x10ff   :  { %v814_v13 = vsel %vm164_vm1, %v1476_v25, %v812_v42  ;;  %v1095_v19 = vpop.eup %1094  ;;  %v861_v25 = vmul.f32 %v1488_v50, %v1471_v21 }
0x1100   :  { %816 = vst.msk [vmem:[#allocation9 + $0xc] sm:$0x3] %vm263_vm2, %v814_v13  ;;  %v423_v20 = vmul.f32 %v1095_v19, %v421_v1  ;;  %v1097_v23 = vpop.eup %1096  ;;  %vm428_vm11 = vweird.f32 %v1095_v19 }
0x1101   :  { %v699_v27 = vmul.f32 %v1097_v23, %v697_v18  ;;  %vm429_vm13 = vmor %vm427_vm12, %vm428_vm11  ;;  %vm704_vm15 = vweird.f32 %v1097_v23 }
0x1102   :  { %v424_v22 = vsub.f32 1.0, %v423_v20  ;;  %vm705_vm3 = vmor %vm703_vm0, %vm704_vm15 }
0x1103   :  { %v700_v32 = vsub.f32 1.0, %v699_v27 }
0x1104   :  { %v425_v30 = vmul.f32 %v1095_v19, %v424_v22 }
0x1105   :  { %v701_v38 = vmul.f32 %v1097_v23, %v700_v32 }
0x1106   :  { %v426_v58 = vadd.f32 %v1095_v19, %v425_v30 }
0x1107   :  { %v702_v40 = vadd.f32 %v1097_v23, %v701_v38 }
0x1108   :  { %v430_v21 = vsel %vm429_vm13, %v1095_v19, %v426_v58 }
0x1109   :  { %v435_v39 = vsel %vm432_vm14, %v434_v3, %v430_v21  ;;  %v706_v41 = vsel %vm705_vm3, %v1097_v23, %v702_v40 }
0x110a   :  { %v437_v44 = vadd.f32 1e-05, %v435_v39  ;;  %v711_v60 = vsel %vm708_vm4, %v710_v46, %v706_v41 }
0x110b   :  { %v713_v47 = vadd.f32 1e-05, %v711_v60 }
0x115b   :  { %v869_v24 = vpop.permute.xlu0 %868 }
0x115c   :  { %v871_v26 = vadd.f32 %v869_v24, %v861_v25 }
0x115e   :  { %1098 = vtanh.f32 %v871_v26  ;;  %911 = vrot.lane.b32.xlu2 %v871_v26, %s1263_s0 }
0x1163   :  { %v352_v34 = vpop.permute.xlu0 %351 }
0x1164   :  { %v1099_v36 = vpop.eup %1098  ;;  %v354_v37 = vsel %vm164_vm1, %v1412_v4, %v352_v34 }
0x1165   :  { %356 = vst.msk [vmem:[#allocation9 + $0x2] sm:$0x3] %vm263_vm2, %v354_v37  ;;  %874 = vrot.lane.b32.xlu1 %v1099_v36, %s1261_s6 }
0x116b   :  { %v628_v28 = vpop.permute.xlu0 %627 }
0x116c   :  { %v630_v4 = vsel %vm164_vm1, %v1454_v29, %v628_v28 }
0x116d   :  { %632 = vst.msk [vmem:[#allocation9 + $0x8] sm:$0x3] %vm263_vm2, %v630_v4  ;;  %443 = vrot.lane.b32.xlu1 %v437_v44, %s1262_s16 }
0x1175   :  { %719 = vrot.lane.b32.xlu1 %v713_v47, %s1262_s16 }
0x11b8   :  { %v912_v48 = vpop.permute.xlu2 %911 }
0x11b9   :  { %914 = vst.msk [vmem:[#allocation12] sm:$0x3] %vm263_vm2, %v912_v48 }
0x11d7   :  { %v875_v49 = vpop.permute.xlu1 %874 }
0x11d8   :  { %v877_v51 = vmul.f32 %v875_v49, %v1488_v50 }
0x11da   :  { %v994_v52 = vmul.f32 -1.442695, %v877_v51  ;;  %899 = vrot.lane.b32.xlu0 %v877_v51, %s1262_s16 }
0x11dc   :  { %1100 = vpow2.f32 %v994_v52 }
0x11df   :  { %v444_v29 = vpop.permute.xlu1 %443 }
0x11e0   :  { %v446_v53 = vsel %vm164_vm1, %v1423_v31, %v444_v29 }
0x11e1   :  { %448 = vst.msk [vmem:[#allocation9 + $0x4] sm:$0x3] %vm263_vm2, %v446_v53 }
0x11e2   :  { %v1101_v55 = vpop.eup %1100 }
0x11e3   :  { %v881_v56 = vadd.f32 1.0, %v1101_v55 }
0x11e5   :  { %1102 = vrcp.f32 %v881_v56  ;;  %v893_v0 = vand.u32 2147483648, %v881_v56  ;;  %v891_v5 = vand.u32 2147483647, %v881_v56  ;;  %vm887_vm6 = vweird.f32 %v881_v56 }
0x11e7   :  { %v720_v57 = vpop.permute.xlu1 %719  ;;  %v894_v6 = vor.u32 1.1754944e-38, %v893_v0  ;;  %vm892_vm8 = vcmp.eq.f32.partialorder %v891_v5, 8.507059e+37 }
0x11e8   :  { %v722_v61 = vsel %vm164_vm1, %v1465_v59, %v720_v57 }
0x11e9   :  { %724 = vst.msk [vmem:[#allocation9 + $0xa] sm:$0x3] %vm263_vm2, %v722_v61 }
0x11eb   :  { %v1103_v50 = vpop.eup %1102 }
0x11ec   :  { %v883_v62 = vmul.f32 %v1103_v50, %v881_v56  ;;  %vm888_vm5 = vweird.f32 %v1103_v50 }
0x11ed   :  { %vm889_vm7 = vmor %vm887_vm6, %vm888_vm5 }
0x11ee   :  { %v884_v63 = vsub.f32 1.0, %v883_v62 }
0x11f0   :  { %v885_v2 = vmul.f32 %v1103_v50, %v884_v63 }
0x11f2   :  { %v886_v31 = vadd.f32 %v1103_v50, %v885_v2 }
0x11f4   :  { %v890_v7 = vsel %vm889_vm7, %v1103_v50, %v886_v31 }
0x11f5   :  { %v895_v8 = vsel %vm892_vm8, %v894_v6, %v890_v7 }
0x11f6   :  { %v897_v9 = vadd.f32 1e-05, %v895_v8 }
0x11f8   :  { %903 = vrot.lane.b32.xlu1 %v897_v9, %s1262_s16 }
0x124c   :  { %v900_v59 = vpop.permute.xlu0 %899 }
0x124d   :  { %909 = vst.msk [vmem:[#allocation10] sm:$0x3] %vm263_vm2, %v900_v59 }
0x124e   :  { %938 = dma.vmem_to_hbm [thread:$0]  %s934_s20, 32, %s936_s23, [#allocation11]  }
0x124f   :  { %949 = dma.vmem_to_hbm [thread:$0]  %s945_s25, 32, %s947_s4, [#allocation11]  }
0x126a   :  { %v904_v10 = vpop.permute.xlu1 %903 }
0x126b   :  { %v906_v12 = vsel %vm164_vm1, %v900_v59, %v904_v10 }
0x126c   :  { %908 = vst.msk [vmem:[#allocation9 + $0xe] sm:$0x3] %vm263_vm2, %v906_v12 }
0x126d   :  { %927 = dma.vmem_to_hbm [thread:$0]  %s920_s5, 256, %s922_s29, [#allocation5], %s1262_s16, %s1262_s16, %s1267_s10  }
0x126e   :  { %1252 = dma.done.wait [#allocation5], 256  }
0x126f   :  { %1253 = vsyncadd [#allocation5], 4294967040 }
0x1270   :  { %1254 = dma.done.wait [#allocation11], 64  }
0x1271   :  { %1255 = vsyncadd [#allocation11], 4294967232 }
0x1272   :  { %962 = vsyncpa [#allocation4], 1 }
0x1273   :  { %963 = vsyncpa [#allocation7], 1 }
0x1274   :  { %964 = vsyncpa [#allocation5], 1 }
0x1275   :  { %965 = vsyncpa [#allocation11], 1 }

</bundles_post_ra>
